<compile_context>
chip_gen: v7x
topology: tpu7x:2x2x1
jax: 0.10.0
libtpu: 0.0.40
codegen_flags: <defaults>
</compile_context>

<pallas_src>
import functools

import numpy as np

import jax
import jax.numpy as jnp
from jax.experimental import pallas as pl
from jax.experimental.pallas import tpu as pltpu

# ------------------------- architecture constants (module defaults) ----------
AE_INPUT = 32        # obs spatial size
AE_OUTPUT = 64       # encoder output size
CODE = 32            # VAE code size
IN_CH = 1
STATE = 4
CONTROL = 0
LATENT_IN = AE_OUTPUT + 2 * STATE          # 72

C1, K1, ST1 = 8, 6, 2                      # conv1: 1->8, k6, s2 (32 -> 14)
C2, K2, ST2 = 16, 3, 2                     # conv2: 8->16, k3, s2 (14 -> 6)
CONV1_O = (AE_INPUT - K1) // ST1 + 1       # 14
CONV2_O = (CONV1_O - K2) // ST2 + 1        # 6
POOL_O = CONV2_O // 2                      # 3
NPOS1 = CONV1_O * CONV1_O                  # 196
NPOS2 = CONV2_O * CONV2_O                  # 36
POOL_N = POOL_O * POOL_O                   # 9
NTAP2 = K2 * K2                            # 9
FLAT = C2 * POOL_N                         # 144

VMEM = pltpu.MemorySpace.VMEM
SMEM = pltpu.MemorySpace.SMEM


# ------------------------- the single fused Pallas kernel --------------------
def _fused_kernel(alpha_ref, p1_ref, x_ref, eps_ref, sel_ref,
                  w1_ref, b1_ref, w2_ref, b2_ref,
                  h1w_ref, h1b_ref, h2w_ref, h2b_ref,
                  mwz_ref, mwx_ref, mvb_ref,
                  dw_ref, db_ref,
                  q1w_ref, q1b_ref, q2w_ref, q2b_ref,
                  q3w_ref, q3b_ref, q4w_ref, q4b_ref,
                  out_ref, feat_ref):
    def mm(a, b):
        return jnp.dot(a, b, preferred_element_type=jnp.float32)

    def prelu(h, a):
        return jnp.where(h > 0, h, a * h)

    B = out_ref.shape[0]
    n2 = B * NPOS2

    # ---- conv1: one lane-dense GEMM over pre-gathered im2col patches --------
    # [C1, 36] @ [36, B*196] -> [8, B*196]   (channels on sublane, spatial on lane)
    f1 = prelu(mm(w1_ref[...], p1_ref[...]) + b1_ref[...], alpha_ref[0])

    # ---- conv2 im2col: gather expressed as a 0/1 selection-matrix GEMM ------
    # Columns of sel are ordered (tap, batch, pool_phase, i, j), so every later
    # access is a contiguous lane slice.  [8, B*196] @ [B*196, 9*B*36]
    g = mm(f1, sel_ref[...])

    # ---- conv2: accumulate the 9 taps ---------------------------------------
    acc = jnp.zeros((C2, n2), jnp.float32)
    for k in range(NTAP2):
        acc = acc + mm(w2_ref[k], g[:, k * n2:(k + 1) * n2])
    y2 = prelu(acc + b2_ref[...], alpha_ref[1])               # [16, B*36]

    # ---- 2x2 max-pool (VPU, pool phases are contiguous 9-wide lane blocks) --
    # followed by the torch (C,H,W) flatten via a tiny VMEM scratch.
    for b in range(B):
        blk = y2[:, b * NPOS2:(b + 1) * NPOS2]                # [16, 36]
        pooled = jnp.maximum(
            jnp.maximum(blk[:, 0:POOL_N], blk[:, POOL_N:2 * POOL_N]),
            jnp.maximum(blk[:, 2 * POOL_N:3 * POOL_N], blk[:, 3 * POOL_N:4 * POOL_N]))
        for c in range(C2):
            feat_ref[b:b + 1, POOL_N * c:POOL_N * (c + 1)] = pooled[c:c + 1, :]
    feat = feat_ref[...]                                      # [B, 144]

    # ---- encoder head ---------------------------------------------------------
    h = prelu(mm(feat, h1w_ref[...]) + h1b_ref[...], alpha_ref[2])
    z = mm(h, h2w_ref[...]) + h2b_ref[...]                    # [B, 64]
    xs = x_ref[...]                                           # [B, 8]

    # ---- merged mu/logvar projection (cat(z, x) folded into split weights) ---
    mv = mm(z, mwz_ref[...]) + mm(xs, mwx_ref[...]) + mvb_ref[...]   # [B, 2*CODE]
    mu = mv[:, :CODE]
    logvar = mv[:, CODE:]
    std = jnp.exp(0.5 * logvar)
    z_enc = mu + eps_ref[...] * std
    zx = mm(z_enc, dw_ref[...]) + db_ref[...]                 # [B, 72]

    # ---- PNet MLP (dropout = eval-mode identity) ------------------------------
    h = prelu(mm(zx, q1w_ref[...]) + q1b_ref[...], alpha_ref[3])
    h = prelu(mm(h, q2w_ref[...]) + q2b_ref[...], alpha_ref[4])
    h = prelu(mm(h, q3w_ref[...]) + q3b_ref[...], alpha_ref[5])
    out_ref[...] = mm(h, q4w_ref[...]) + q4b_ref[...]


# ------------------------- glue: input prep + forward -------------------------
def _conv1_patches(obs):
    """[B,C,H,W] -> im2col patches [K1*K1*C, B*196]; rows ordered (ki,kj,cin)."""
    B, C, H, W = obs.shape
    x = jnp.transpose(obs, (0, 2, 3, 1))                       # NHWC
    span = (CONV1_O - 1) * ST1 + 1
    taps = []
    for ki in range(K1):
        for kj in range(K1):
            taps.append(x[:, ki:ki + span:ST1, kj:kj + span:ST1, :])   # [B,14,14,C]
    p = jnp.stack(taps, axis=0)                                # [36, B, 14, 14, C]
    p = jnp.transpose(p, (0, 4, 1, 2, 3))                      # [36, C, B, 14, 14]
    return p.reshape(K1 * K1 * C, B * NPOS1)


@functools.lru_cache(maxsize=None)
def _conv2_gather_matrix(batch):
    """0/1 matrix turning conv1 output [8, B*196] into all conv2 tap inputs.

    Columns ordered (tap k, batch b, pool-phase (di,dj), i, j) so tap slices and
    pool phases are contiguous lane blocks inside the kernel."""
    sel = np.zeros((batch * NPOS1, NTAP2 * batch * NPOS2), np.float32)
    for b in range(batch):
        for ki in range(K2):
            for kj in range(K2):
                k = ki * K2 + kj
                for di in range(2):
                    for dj in range(2):
                        for i in range(POOL_O):
                            for j in range(POOL_O):
                                oi, oj = 2 * i + di, 2 * j + dj
                                s_in = (ST2 * oi + ki) * CONV1_O + (ST2 * oj + kj)
                                col = ((di * 2 + dj) * POOL_O + i) * POOL_O + j
                                sel[b * NPOS1 + s_in,
                                    (k * batch + b) * NPOS2 + col] = 1.0
    return jnp.asarray(sel)


def vae_mpnet_forward(params, x, obs, eps, code_var=1.0):
    """Forward of VAEMPNet.  eps ~ N(0,1) is supplied (torch.randn_like equivalent)."""
    # TODO(synk): obs=None branch (z_x = x) of the reference forward is not implemented.
    B = obs.shape[0]
    p1 = _conv1_patches(obs)
    sel = _conv2_gather_matrix(B)
    eps_scaled = (eps * code_var).astype(jnp.float32)

    args = (params['alphas'], p1, x, eps_scaled, sel,
            params['w1'], params['b1'], params['w2'], params['b2'],
            params['h1w'], params['h1b'], params['h2w'], params['h2b'],
            params['mwz'], params['mwx'], params['mvb'],
            params['dw'], params['db'],
            params['q1w'], params['q1b'], params['q2w'], params['q2b'],
            params['q3w'], params['q3b'], params['q4w'], params['q4b'])
    in_specs = ([pl.BlockSpec(memory_space=SMEM)]
                + [pl.BlockSpec(memory_space=VMEM)] * (len(args) - 1))
    return pl.pallas_call(
        _fused_kernel,
        out_shape=jax.ShapeDtypeStruct((B, STATE + CONTROL), jnp.float32),
        in_specs=in_specs,
        out_specs=pl.BlockSpec(memory_space=VMEM),
        scratch_shapes=[pltpu.VMEM((B, FLAT), jnp.float32)],
    )(*args)


# ------------------------- deterministic parameter init -----------------------
def init_params(key):
    ks = jax.random.split(key, 11)

    def linear(k, fan_in, fan_out):
        k1, k2 = jax.random.split(k)
        bound = 1.0 / (fan_in ** 0.5)
        w = jax.random.uniform(k1, (fan_out, fan_in), jnp.float32, -bound, bound)
        b = jax.random.uniform(k2, (fan_out,), jnp.float32, -bound, bound)
        return w, b

    def conv(k, cin, cout, ksz):
        k1, k2 = jax.random.split(k)
        fan_in = cin * ksz * ksz
        bound = 1.0 / (fan_in ** 0.5)
        w = jax.random.uniform(k1, (cout, cin, ksz, ksz), jnp.float32, -bound, bound)
        b = jax.random.uniform(k2, (cout,), jnp.float32, -bound, bound)
        return w, b

    c1w, c1b = conv(ks[0], IN_CH, C1, K1)
    c2w, c2b = conv(ks[1], C1, C2, K2)
    h1w, h1b = linear(ks[2], FLAT, 128)
    h2w, h2b = linear(ks[3], 128, AE_OUTPUT)
    mw, mb = linear(ks[4], LATENT_IN, CODE)
    vw, vb = linear(ks[5], LATENT_IN, CODE)
    dw, db = linear(ks[6], CODE, LATENT_IN)
    q1w, q1b = linear(ks[7], LATENT_IN, 128)
    q2w, q2b = linear(ks[8], 128, 64)
    q3w, q3b = linear(ks[9], 64, 32)
    q4w, q4b = linear(ks[10], 32, STATE + CONTROL)

    row = lambda b: b.reshape(1, -1)
    col = lambda b: b.reshape(-1, 1)
    lin = lambda w: w.T

    # conv1 weight [Cout,Cin,kh,kw] -> [Cout, (ki,kj,cin)]  (matches im2col row order)
    w1 = jnp.transpose(c1w, (0, 2, 3, 1)).reshape(C1, K1 * K1 * IN_CH)
    # conv2 weight -> one [Cout, Cin] slab per tap k = ki*K2 + kj
    w2 = jnp.transpose(c2w, (2, 3, 0, 1)).reshape(NTAP2, C2, C1)

    # merged mean/var projection, split into z-part / x-part of cat((z, x), 1)
    mwT, vwT = mw.T, vw.T                                            # [72, 32] each
    mwz = jnp.concatenate([mwT[:AE_OUTPUT], vwT[:AE_OUTPUT]], axis=1)   # [64, 64]
    mwx = jnp.concatenate([mwT[AE_OUTPUT:], vwT[AE_OUTPUT:]], axis=1)   # [8, 64]
    mvb = jnp.concatenate([mb, vb]).reshape(1, -1)                      # [1, 64]

    alpha = 0.25                                # nn.PReLU() default
    return dict(
        alphas=jnp.full((6,), alpha, jnp.float32),   # conv1, conv2, head, pnet1..3
        w1=w1, b1=col(c1b), w2=w2, b2=col(c2b),
        h1w=lin(h1w), h1b=row(h1b), h2w=lin(h2w), h2b=row(h2b),
        mwz=mwz, mwx=mwx, mvb=mvb,
        dw=lin(dw), db=row(db),
        q1w=lin(q1w), q1b=row(q1b),
        q2w=lin(q2w), q2b=row(q2b),
        q3w=lin(q3w), q3b=row(q3b),
        q4w=lin(q4w), q4b=row(q4b),
    )


if __name__ == "__main__":
    key = jax.random.PRNGKey(0)
    kp, kx, ko, ke = jax.random.split(key, 4)
    params = init_params(kp)

    B = 2
    x = jax.random.normal(kx, (B, 2 * STATE), jnp.float32)                    # [2, 8]
    obs = jax.random.normal(ko, (B, IN_CH, AE_INPUT, AE_INPUT), jnp.float32)  # [2,1,32,32]
    eps = jax.random.normal(ke, (B, CODE), jnp.float32)                       # randn_like(std)

    fwd = jax.jit(functools.partial(vae_mpnet_forward, code_var=1.0))
    out = jax.block_until_ready(fwd(params, x, obs, eps))
    assert out.shape == (B, STATE + CONTROL) and out.dtype == jnp.float32
    print("KERNEL_OK")
</pallas_src>

<mosaic_0001>
module attributes {stable_mosaic.version = 11 : i64} {
  func.func @_fused_kernel(%arg0: memref<6xf32, #tpu.memory_space<smem>>, %arg1: memref<36x392xf32, #tpu.memory_space<vmem>>, %arg2: memref<2x8xf32, #tpu.memory_space<vmem>>, %arg3: memref<2x32xf32, #tpu.memory_space<vmem>>, %arg4: memref<392x648xf32, #tpu.memory_space<vmem>>, %arg5: memref<8x36xf32, #tpu.memory_space<vmem>>, %arg6: memref<8x1xf32, #tpu.memory_space<vmem>>, %arg7: memref<9x16x8xf32, #tpu.memory_space<vmem>>, %arg8: memref<16x1xf32, #tpu.memory_space<vmem>>, %arg9: memref<144x128xf32, #tpu.memory_space<vmem>>, %arg10: memref<1x128xf32, #tpu.memory_space<vmem>>, %arg11: memref<128x64xf32, #tpu.memory_space<vmem>>, %arg12: memref<1x64xf32, #tpu.memory_space<vmem>>, %arg13: memref<64x64xf32, #tpu.memory_space<vmem>>, %arg14: memref<8x64xf32, #tpu.memory_space<vmem>>, %arg15: memref<1x64xf32, #tpu.memory_space<vmem>>, %arg16: memref<32x72xf32, #tpu.memory_space<vmem>>, %arg17: memref<1x72xf32, #tpu.memory_space<vmem>>, %arg18: memref<72x128xf32, #tpu.memory_space<vmem>>, %arg19: memref<1x128xf32, #tpu.memory_space<vmem>>, %arg20: memref<128x64xf32, #tpu.memory_space<vmem>>, %arg21: memref<1x64xf32, #tpu.memory_space<vmem>>, %arg22: memref<64x32xf32, #tpu.memory_space<vmem>>, %arg23: memref<1x32xf32, #tpu.memory_space<vmem>>, %arg24: memref<32x4xf32, #tpu.memory_space<vmem>>, %arg25: memref<1x4xf32, #tpu.memory_space<vmem>>, %arg26: memref<2x4xf32, #tpu.memory_space<vmem>>, %arg27: memref<2x144xf32, #tpu.memory_space<vmem>>) attributes {dimension_semantics = [], scalar_prefetch = 0 : i64, scratch_operands = 1 : i64, tpu.core_type = #tpu.core_type<tc>} {
    %c0 = arith.constant 0 : index
    %c0_0 = arith.constant 0 : index
    %0 = vector.load %arg5[%c0, %c0_0] : memref<8x36xf32, #tpu.memory_space<vmem>>, vector<8x36xf32>
    %c0_1 = arith.constant 0 : index
    %c0_2 = arith.constant 0 : index
    %1 = vector.load %arg1[%c0_1, %c0_2] : memref<36x392xf32, #tpu.memory_space<vmem>>, vector<36x392xf32>
    %cst = arith.constant dense<0.000000e+00> : vector<8x392xf32>
    %2 = tpu.matmul %0, %1, %cst {dimension_numbers = #tpu.dot_dimension_numbers<[1], [0], [0], [1], [0, 0, 1, 1], [], []>} : vector<8x36xf32>, vector<36x392xf32>, vector<8x392xf32> -> vector<8x392xf32>
    %c0_3 = arith.constant 0 : index
    %c0_4 = arith.constant 0 : index
    %3 = vector.load %arg6[%c0_3, %c0_4] : memref<8x1xf32, #tpu.memory_space<vmem>>, vector<8x1xf32>
    %4 = vector.broadcast %3 : vector<8x1xf32> to vector<8x392xf32>
    %5 = arith.addf %2, %4 : vector<8x392xf32>
    %c0_5 = arith.constant 0 : index
    %6 = memref.load %arg0[%c0_5] : memref<6xf32, #tpu.memory_space<smem>>
    %cst_6 = arith.constant 0.000000e+00 : f32
    %7 = vector.broadcast %cst_6 : f32 to vector<8x392xf32>
    %8 = arith.cmpf ogt, %5, %7 : vector<8x392xf32>
    %9 = vector.broadcast %6 : f32 to vector<8x392xf32>
    %10 = arith.mulf %9, %5 : vector<8x392xf32>
    %11 = arith.select %8, %5, %10 : vector<8x392xi1>, vector<8x392xf32>
    %c0_7 = arith.constant 0 : index
    %c0_8 = arith.constant 0 : index
    %12 = vector.load %arg4[%c0_7, %c0_8] : memref<392x648xf32, #tpu.memory_space<vmem>>, vector<392x648xf32>
    %cst_9 = arith.constant dense<0.000000e+00> : vector<8x648xf32>
    %13 = tpu.matmul %11, %12, %cst_9 {dimension_numbers = #tpu.dot_dimension_numbers<[1], [0], [0], [1], [0, 0, 1, 1], [], []>} : vector<8x392xf32>, vector<392x648xf32>, vector<8x648xf32> -> vector<8x648xf32>
    %cst_10 = arith.constant 0.000000e+00 : f32
    %14 = vector.broadcast %cst_10 : f32 to vector<16x72xf32>
    %c0_11 = arith.constant 0 : index
    %c0_12 = arith.constant 0 : index
    %c0_13 = arith.constant 0 : index
    %15 = vector.load %arg7[%c0_11, %c0_12, %c0_13] : memref<9x16x8xf32, #tpu.memory_space<vmem>>, vector<1x16x8xf32>
    %16 = vector.shape_cast %15 : vector<1x16x8xf32> to vector<16x8xf32>
    %17 = vector.extract_strided_slice %13 {offsets = [0, 0], sizes = [8, 72], strides = [1, 1]} : vector<8x648xf32> to vector<8x72xf32>
    %cst_14 = arith.constant dense<0.000000e+00> : vector<16x72xf32>
    %18 = tpu.matmul %16, %17, %cst_14 {dimension_numbers = #tpu.dot_dimension_numbers<[1], [0], [0], [1], [0, 0, 1, 1], [], []>} : vector<16x8xf32>, vector<8x72xf32>, vector<16x72xf32> -> vector<16x72xf32>
    %19 = arith.addf %14, %18 : vector<16x72xf32>
    %c1 = arith.constant 1 : index
    %c0_15 = arith.constant 0 : index
    %c0_16 = arith.constant 0 : index
    %20 = vector.load %arg7[%c1, %c0_15, %c0_16] : memref<9x16x8xf32, #tpu.memory_space<vmem>>, vector<1x16x8xf32>
    %21 = vector.shape_cast %20 : vector<1x16x8xf32> to vector<16x8xf32>
    %22 = vector.extract_strided_slice %13 {offsets = [0, 72], sizes = [8, 72], strides = [1, 1]} : vector<8x648xf32> to vector<8x72xf32>
    %cst_17 = arith.constant dense<0.000000e+00> : vector<16x72xf32>
    %23 = tpu.matmul %21, %22, %cst_17 {dimension_numbers = #tpu.dot_dimension_numbers<[1], [0], [0], [1], [0, 0, 1, 1], [], []>} : vector<16x8xf32>, vector<8x72xf32>, vector<16x72xf32> -> vector<16x72xf32>
    %24 = arith.addf %19, %23 : vector<16x72xf32>
    %c2 = arith.constant 2 : index
    %c0_18 = arith.constant 0 : index
    %c0_19 = arith.constant 0 : index
    %25 = vector.load %arg7[%c2, %c0_18, %c0_19] : memref<9x16x8xf32, #tpu.memory_space<vmem>>, vector<1x16x8xf32>
    %26 = vector.shape_cast %25 : vector<1x16x8xf32> to vector<16x8xf32>
    %27 = vector.extract_strided_slice %13 {offsets = [0, 144], sizes = [8, 72], strides = [1, 1]} : vector<8x648xf32> to vector<8x72xf32>
    %cst_20 = arith.constant dense<0.000000e+00> : vector<16x72xf32>
    %28 = tpu.matmul %26, %27, %cst_20 {dimension_numbers = #tpu.dot_dimension_numbers<[1], [0], [0], [1], [0, 0, 1, 1], [], []>} : vector<16x8xf32>, vector<8x72xf32>, vector<16x72xf32> -> vector<16x72xf32>
    %29 = arith.addf %24, %28 : vector<16x72xf32>
    %c3 = arith.constant 3 : index
    %c0_21 = arith.constant 0 : index
    %c0_22 = arith.constant 0 : index
    %30 = vector.load %arg7[%c3, %c0_21, %c0_22] : memref<9x16x8xf32, #tpu.memory_space<vmem>>, vector<1x16x8xf32>
    %31 = vector.shape_cast %30 : vector<1x16x8xf32> to vector<16x8xf32>
    %32 = vector.extract_strided_slice %13 {offsets = [0, 216], sizes = [8, 72], strides = [1, 1]} : vector<8x648xf32> to vector<8x72xf32>
    %cst_23 = arith.constant dense<0.000000e+00> : vector<16x72xf32>
    %33 = tpu.matmul %31, %32, %cst_23 {dimension_numbers = #tpu.dot_dimension_numbers<[1], [0], [0], [1], [0, 0, 1, 1], [], []>} : vector<16x8xf32>, vector<8x72xf32>, vector<16x72xf32> -> vector<16x72xf32>
    %34 = arith.addf %29, %33 : vector<16x72xf32>
    %c4 = arith.constant 4 : index
    %c0_24 = arith.constant 0 : index
    %c0_25 = arith.constant 0 : index
    %35 = vector.load %arg7[%c4, %c0_24, %c0_25] : memref<9x16x8xf32, #tpu.memory_space<vmem>>, vector<1x16x8xf32>
    %36 = vector.shape_cast %35 : vector<1x16x8xf32> to vector<16x8xf32>
    %37 = vector.extract_strided_slice %13 {offsets = [0, 288], sizes = [8, 72], strides = [1, 1]} : vector<8x648xf32> to vector<8x72xf32>
    %cst_26 = arith.constant dense<0.000000e+00> : vector<16x72xf32>
    %38 = tpu.matmul %36, %37, %cst_26 {dimension_numbers = #tpu.dot_dimension_numbers<[1], [0], [0], [1], [0, 0, 1, 1], [], []>} : vector<16x8xf32>, vector<8x72xf32>, vector<16x72xf32> -> vector<16x72xf32>
    %39 = arith.addf %34, %38 : vector<16x72xf32>
    %c5 = arith.constant 5 : index
    %c0_27 = arith.constant 0 : index
    %c0_28 = arith.constant 0 : index
    %40 = vector.load %arg7[%c5, %c0_27, %c0_28] : memref<9x16x8xf32, #tpu.memory_space<vmem>>, vector<1x16x8xf32>
    %41 = vector.shape_cast %40 : vector<1x16x8xf32> to vector<16x8xf32>
    %42 = vector.extract_strided_slice %13 {offsets = [0, 360], sizes = [8, 72], strides = [1, 1]} : vector<8x648xf32> to vector<8x72xf32>
    %cst_29 = arith.constant dense<0.000000e+00> : vector<16x72xf32>
    %43 = tpu.matmul %41, %42, %cst_29 {dimension_numbers = #tpu.dot_dimension_numbers<[1], [0], [0], [1], [0, 0, 1, 1], [], []>} : vector<16x8xf32>, vector<8x72xf32>, vector<16x72xf32> -> vector<16x72xf32>
    %44 = arith.addf %39, %43 : vector<16x72xf32>
    %c6 = arith.constant 6 : index
    %c0_30 = arith.constant 0 : index
    %c0_31 = arith.constant 0 : index
    %45 = vector.load %arg7[%c6, %c0_30, %c0_31] : memref<9x16x8xf32, #tpu.memory_space<vmem>>, vector<1x16x8xf32>
    %46 = vector.shape_cast %45 : vector<1x16x8xf32> to vector<16x8xf32>
    %47 = vector.extract_strided_slice %13 {offsets = [0, 432], sizes = [8, 72], strides = [1, 1]} : vector<8x648xf32> to vector<8x72xf32>
    %cst_32 = arith.constant dense<0.000000e+00> : vector<16x72xf32>
    %48 = tpu.matmul %46, %47, %cst_32 {dimension_numbers = #tpu.dot_dimension_numbers<[1], [0], [0], [1], [0, 0, 1, 1], [], []>} : vector<16x8xf32>, vector<8x72xf32>, vector<16x72xf32> -> vector<16x72xf32>
    %49 = arith.addf %44, %48 : vector<16x72xf32>
    %c7 = arith.constant 7 : index
    %c0_33 = arith.constant 0 : index
    %c0_34 = arith.constant 0 : index
    %50 = vector.load %arg7[%c7, %c0_33, %c0_34] : memref<9x16x8xf32, #tpu.memory_space<vmem>>, vector<1x16x8xf32>
    %51 = vector.shape_cast %50 : vector<1x16x8xf32> to vector<16x8xf32>
    %52 = vector.extract_strided_slice %13 {offsets = [0, 504], sizes = [8, 72], strides = [1, 1]} : vector<8x648xf32> to vector<8x72xf32>
    %cst_35 = arith.constant dense<0.000000e+00> : vector<16x72xf32>
    %53 = tpu.matmul %51, %52, %cst_35 {dimension_numbers = #tpu.dot_dimension_numbers<[1], [0], [0], [1], [0, 0, 1, 1], [], []>} : vector<16x8xf32>, vector<8x72xf32>, vector<16x72xf32> -> vector<16x72xf32>
    %54 = arith.addf %49, %53 : vector<16x72xf32>
    %c8 = arith.constant 8 : index
    %c0_36 = arith.constant 0 : index
    %c0_37 = arith.constant 0 : index
    %55 = vector.load %arg7[%c8, %c0_36, %c0_37] : memref<9x16x8xf32, #tpu.memory_space<vmem>>, vector<1x16x8xf32>
    %56 = vector.shape_cast %55 : vector<1x16x8xf32> to vector<16x8xf32>
    %57 = vector.extract_strided_slice %13 {offsets = [0, 576], sizes = [8, 72], strides = [1, 1]} : vector<8x648xf32> to vector<8x72xf32>
    %cst_38 = arith.constant dense<0.000000e+00> : vector<16x72xf32>
    %58 = tpu.matmul %56, %57, %cst_38 {dimension_numbers = #tpu.dot_dimension_numbers<[1], [0], [0], [1], [0, 0, 1, 1], [], []>} : vector<16x8xf32>, vector<8x72xf32>, vector<16x72xf32> -> vector<16x72xf32>
    %59 = arith.addf %54, %58 : vector<16x72xf32>
    %c0_39 = arith.constant 0 : index
    %c0_40 = arith.constant 0 : index
    %60 = vector.load %arg8[%c0_39, %c0_40] : memref<16x1xf32, #tpu.memory_space<vmem>>, vector<16x1xf32>
    %61 = vector.broadcast %60 : vector<16x1xf32> to vector<16x72xf32>
    %62 = arith.addf %59, %61 : vector<16x72xf32>
    %c1_41 = arith.constant 1 : index
    %63 = memref.load %arg0[%c1_41] : memref<6xf32, #tpu.memory_space<smem>>
    %cst_42 = arith.constant 0.000000e+00 : f32
    %64 = vector.broadcast %cst_42 : f32 to vector<16x72xf32>
    %65 = arith.cmpf ogt, %62, %64 : vector<16x72xf32>
    %66 = vector.broadcast %63 : f32 to vector<16x72xf32>
    %67 = arith.mulf %66, %62 : vector<16x72xf32>
    %68 = arith.select %65, %62, %67 : vector<16x72xi1>, vector<16x72xf32>
    %69 = vector.extract_strided_slice %68 {offsets = [0, 0], sizes = [16, 36], strides = [1, 1]} : vector<16x72xf32> to vector<16x36xf32>
    %70 = vector.extract_strided_slice %69 {offsets = [0, 0], sizes = [16, 9], strides = [1, 1]} : vector<16x36xf32> to vector<16x9xf32>
    %71 = vector.extract_strided_slice %69 {offsets = [0, 9], sizes = [16, 9], strides = [1, 1]} : vector<16x36xf32> to vector<16x9xf32>
    %72 = arith.maximumf %70, %71 : vector<16x9xf32>
    %73 = vector.extract_strided_slice %69 {offsets = [0, 18], sizes = [16, 9], strides = [1, 1]} : vector<16x36xf32> to vector<16x9xf32>
    %74 = vector.extract_strided_slice %69 {offsets = [0, 27], sizes = [16, 9], strides = [1, 1]} : vector<16x36xf32> to vector<16x9xf32>
    %75 = arith.maximumf %73, %74 : vector<16x9xf32>
    %76 = arith.maximumf %72, %75 : vector<16x9xf32>
    %77 = vector.extract_strided_slice %76 {offsets = [0, 0], sizes = [1, 9], strides = [1, 1]} : vector<16x9xf32> to vector<1x9xf32>
    %c0_43 = arith.constant 0 : index
    %c0_44 = arith.constant 0 : index
    %78 = vector.load %arg27[%c0_43, %c0_44] : memref<2x144xf32, #tpu.memory_space<vmem>>, vector<1x9xf32>
    tpu.vector_store %arg27[%c0_43, %c0_44], %77 {strides = array<i32>} : memref<2x144xf32, #tpu.memory_space<vmem>>, vector<1x9xf32>,
    %79 = vector.extract_strided_slice %76 {offsets = [1, 0], sizes = [1, 9], strides = [1, 1]} : vector<16x9xf32> to vector<1x9xf32>
    %c0_45 = arith.constant 0 : index
    %c9 = arith.constant 9 : index
    %80 = vector.load %arg27[%c0_45, %c9] : memref<2x144xf32, #tpu.memory_space<vmem>>, vector<1x9xf32>
    tpu.vector_store %arg27[%c0_45, %c9], %79 {strides = array<i32>} : memref<2x144xf32, #tpu.memory_space<vmem>>, vector<1x9xf32>,
    %81 = vector.extract_strided_slice %76 {offsets = [2, 0], sizes = [1, 9], strides = [1, 1]} : vector<16x9xf32> to vector<1x9xf32>
    %c0_46 = arith.constant 0 : index
    %c18 = arith.constant 18 : index
    %82 = vector.load %arg27[%c0_46, %c18] : memref<2x144xf32, #tpu.memory_space<vmem>>, vector<1x9xf32>
    tpu.vector_store %arg27[%c0_46, %c18], %81 {strides = array<i32>} : memref<2x144xf32, #tpu.memory_space<vmem>>, vector<1x9xf32>,
    %83 = vector.extract_strided_slice %76 {offsets = [3, 0], sizes = [1, 9], strides = [1, 1]} : vector<16x9xf32> to vector<1x9xf32>
    %c0_47 = arith.constant 0 : index
    %c27 = arith.constant 27 : index
    %84 = vector.load %arg27[%c0_47, %c27] : memref<2x144xf32, #tpu.memory_space<vmem>>, vector<1x9xf32>
    tpu.vector_store %arg27[%c0_47, %c27], %83 {strides = array<i32>} : memref<2x144xf32, #tpu.memory_space<vmem>>, vector<1x9xf32>,
    %85 = vector.extract_strided_slice %76 {offsets = [4, 0], sizes = [1, 9], strides = [1, 1]} : vector<16x9xf32> to vector<1x9xf32>
    %c0_48 = arith.constant 0 : index
    %c36 = arith.constant 36 : index
    %86 = vector.load %arg27[%c0_48, %c36] : memref<2x144xf32, #tpu.memory_space<vmem>>, vector<1x9xf32>
    tpu.vector_store %arg27[%c0_48, %c36], %85 {strides = array<i32>} : memref<2x144xf32, #tpu.memory_space<vmem>>, vector<1x9xf32>,
    %87 = vector.extract_strided_slice %76 {offsets = [5, 0], sizes = [1, 9], strides = [1, 1]} : vector<16x9xf32> to vector<1x9xf32>
    %c0_49 = arith.constant 0 : index
    %c45 = arith.constant 45 : index
    %88 = vector.load %arg27[%c0_49, %c45] : memref<2x144xf32, #tpu.memory_space<vmem>>, vector<1x9xf32>
    tpu.vector_store %arg27[%c0_49, %c45], %87 {strides = array<i32>} : memref<2x144xf32, #tpu.memory_space<vmem>>, vector<1x9xf32>,
    %89 = vector.extract_strided_slice %76 {offsets = [6, 0], sizes = [1, 9], strides = [1, 1]} : vector<16x9xf32> to vector<1x9xf32>
    %c0_50 = arith.constant 0 : index
    %c54 = arith.constant 54 : index
    %90 = vector.load %arg27[%c0_50, %c54] : memref<2x144xf32, #tpu.memory_space<vmem>>, vector<1x9xf32>
    tpu.vector_store %arg27[%c0_50, %c54], %89 {strides = array<i32>} : memref<2x144xf32, #tpu.memory_space<vmem>>, vector<1x9xf32>,
    %91 = vector.extract_strided_slice %76 {offsets = [7, 0], sizes = [1, 9], strides = [1, 1]} : vector<16x9xf32> to vector<1x9xf32>
    %c0_51 = arith.constant 0 : index
    %c63 = arith.constant 63 : index
    %92 = vector.load %arg27[%c0_51, %c63] : memref<2x144xf32, #tpu.memory_space<vmem>>, vector<1x9xf32>
    tpu.vector_store %arg27[%c0_51, %c63], %91 {strides = array<i32>} : memref<2x144xf32, #tpu.memory_space<vmem>>, vector<1x9xf32>,
    %93 = vector.extract_strided_slice %76 {offsets = [8, 0], sizes = [1, 9], strides = [1, 1]} : vector<16x9xf32> to vector<1x9xf32>
    %c0_52 = arith.constant 0 : index
    %c72 = arith.constant 72 : index
    %94 = vector.load %arg27[%c0_52, %c72] : memref<2x144xf32, #tpu.memory_space<vmem>>, vector<1x9xf32>
    tpu.vector_store %arg27[%c0_52, %c72], %93 {strides = array<i32>} : memref<2x144xf32, #tpu.memory_space<vmem>>, vector<1x9xf32>,
    %95 = vector.extract_strided_slice %76 {offsets = [9, 0], sizes = [1, 9], strides = [1, 1]} : vector<16x9xf32> to vector<1x9xf32>
    %c0_53 = arith.constant 0 : index
    %c81 = arith.constant 81 : index
    %96 = vector.load %arg27[%c0_53, %c81] : memref<2x144xf32, #tpu.memory_space<vmem>>, vector<1x9xf32>
    tpu.vector_store %arg27[%c0_53, %c81], %95 {strides = array<i32>} : memref<2x144xf32, #tpu.memory_space<vmem>>, vector<1x9xf32>,
    %97 = vector.extract_strided_slice %76 {offsets = [10, 0], sizes = [1, 9], strides = [1, 1]} : vector<16x9xf32> to vector<1x9xf32>
    %c0_54 = arith.constant 0 : index
    %c90 = arith.constant 90 : index
    %98 = vector.load %arg27[%c0_54, %c90] : memref<2x144xf32, #tpu.memory_space<vmem>>, vector<1x9xf32>
    tpu.vector_store %arg27[%c0_54, %c90], %97 {strides = array<i32>} : memref<2x144xf32, #tpu.memory_space<vmem>>, vector<1x9xf32>,
    %99 = vector.extract_strided_slice %76 {offsets = [11, 0], sizes = [1, 9], strides = [1, 1]} : vector<16x9xf32> to vector<1x9xf32>
    %c0_55 = arith.constant 0 : index
    %c99 = arith.constant 99 : index
    %100 = vector.load %arg27[%c0_55, %c99] : memref<2x144xf32, #tpu.memory_space<vmem>>, vector<1x9xf32>
    tpu.vector_store %arg27[%c0_55, %c99], %99 {strides = array<i32>} : memref<2x144xf32, #tpu.memory_space<vmem>>, vector<1x9xf32>,
    %101 = vector.extract_strided_slice %76 {offsets = [12, 0], sizes = [1, 9], strides = [1, 1]} : vector<16x9xf32> to vector<1x9xf32>
    %c0_56 = arith.constant 0 : index
    %c108 = arith.constant 108 : index
    %102 = vector.load %arg27[%c0_56, %c108] : memref<2x144xf32, #tpu.memory_space<vmem>>, vector<1x9xf32>
    tpu.vector_store %arg27[%c0_56, %c108], %101 {strides = array<i32>} : memref<2x144xf32, #tpu.memory_space<vmem>>, vector<1x9xf32>,
    %103 = vector.extract_strided_slice %76 {offsets = [13, 0], sizes = [1, 9], strides = [1, 1]} : vector<16x9xf32> to vector<1x9xf32>
    %c0_57 = arith.constant 0 : index
    %c117 = arith.constant 117 : index
    %104 = vector.load %arg27[%c0_57, %c117] : memref<2x144xf32, #tpu.memory_space<vmem>>, vector<1x9xf32>
    tpu.vector_store %arg27[%c0_57, %c117], %103 {strides = array<i32>} : memref<2x144xf32, #tpu.memory_space<vmem>>, vector<1x9xf32>,
    %105 = vector.extract_strided_slice %76 {offsets = [14, 0], sizes = [1, 9], strides = [1, 1]} : vector<16x9xf32> to vector<1x9xf32>
    %c0_58 = arith.constant 0 : index
    %c126 = arith.constant 126 : index
    %106 = vector.load %arg27[%c0_58, %c126] : memref<2x144xf32, #tpu.memory_space<vmem>>, vector<1x9xf32>
    tpu.vector_store %arg27[%c0_58, %c126], %105 {strides = array<i32>} : memref<2x144xf32, #tpu.memory_space<vmem>>, vector<1x9xf32>,
    %107 = vector.extract_strided_slice %76 {offsets = [15, 0], sizes = [1, 9], strides = [1, 1]} : vector<16x9xf32> to vector<1x9xf32>
    %c0_59 = arith.constant 0 : index
    %c135 = arith.constant 135 : index
    %108 = vector.load %arg27[%c0_59, %c135] : memref<2x144xf32, #tpu.memory_space<vmem>>, vector<1x9xf32>
    tpu.vector_store %arg27[%c0_59, %c135], %107 {strides = array<i32>} : memref<2x144xf32, #tpu.memory_space<vmem>>, vector<1x9xf32>,
    %109 = vector.extract_strided_slice %68 {offsets = [0, 36], sizes = [16, 36], strides = [1, 1]} : vector<16x72xf32> to vector<16x36xf32>
    %110 = vector.extract_strided_slice %109 {offsets = [0, 0], sizes = [16, 9], strides = [1, 1]} : vector<16x36xf32> to vector<16x9xf32>
    %111 = vector.extract_strided_slice %109 {offsets = [0, 9], sizes = [16, 9], strides = [1, 1]} : vector<16x36xf32> to vector<16x9xf32>
    %112 = arith.maximumf %110, %111 : vector<16x9xf32>
    %113 = vector.extract_strided_slice %109 {offsets = [0, 18], sizes = [16, 9], strides = [1, 1]} : vector<16x36xf32> to vector<16x9xf32>
    %114 = vector.extract_strided_slice %109 {offsets = [0, 27], sizes = [16, 9], strides = [1, 1]} : vector<16x36xf32> to vector<16x9xf32>
    %115 = arith.maximumf %113, %114 : vector<16x9xf32>
    %116 = arith.maximumf %112, %115 : vector<16x9xf32>
    %117 = vector.extract_strided_slice %116 {offsets = [0, 0], sizes = [1, 9], strides = [1, 1]} : vector<16x9xf32> to vector<1x9xf32>
    %c1_60 = arith.constant 1 : index
    %c0_61 = arith.constant 0 : index
    %118 = vector.load %arg27[%c1_60, %c0_61] : memref<2x144xf32, #tpu.memory_space<vmem>>, vector<1x9xf32>
    tpu.vector_store %arg27[%c1_60, %c0_61], %117 {strides = array<i32>} : memref<2x144xf32, #tpu.memory_space<vmem>>, vector<1x9xf32>,
    %119 = vector.extract_strided_slice %116 {offsets = [1, 0], sizes = [1, 9], strides = [1, 1]} : vector<16x9xf32> to vector<1x9xf32>
    %c1_62 = arith.constant 1 : index
    %c9_63 = arith.constant 9 : index
    %120 = vector.load %arg27[%c1_62, %c9_63] : memref<2x144xf32, #tpu.memory_space<vmem>>, vector<1x9xf32>
    tpu.vector_store %arg27[%c1_62, %c9_63], %119 {strides = array<i32>} : memref<2x144xf32, #tpu.memory_space<vmem>>, vector<1x9xf32>,
    %121 = vector.extract_strided_slice %116 {offsets = [2, 0], sizes = [1, 9], strides = [1, 1]} : vector<16x9xf32> to vector<1x9xf32>
    %c1_64 = arith.constant 1 : index
    %c18_65 = arith.constant 18 : index
    %122 = vector.load %arg27[%c1_64, %c18_65] : memref<2x144xf32, #tpu.memory_space<vmem>>, vector<1x9xf32>
    tpu.vector_store %arg27[%c1_64, %c18_65], %121 {strides = array<i32>} : memref<2x144xf32, #tpu.memory_space<vmem>>, vector<1x9xf32>,
    %123 = vector.extract_strided_slice %116 {offsets = [3, 0], sizes = [1, 9], strides = [1, 1]} : vector<16x9xf32> to vector<1x9xf32>
    %c1_66 = arith.constant 1 : index
    %c27_67 = arith.constant 27 : index
    %124 = vector.load %arg27[%c1_66, %c27_67] : memref<2x144xf32, #tpu.memory_space<vmem>>, vector<1x9xf32>
    tpu.vector_store %arg27[%c1_66, %c27_67], %123 {strides = array<i32>} : memref<2x144xf32, #tpu.memory_space<vmem>>, vector<1x9xf32>,
    %125 = vector.extract_strided_slice %116 {offsets = [4, 0], sizes = [1, 9], strides = [1, 1]} : vector<16x9xf32> to vector<1x9xf32>
    %c1_68 = arith.constant 1 : index
    %c36_69 = arith.constant 36 : index
    %126 = vector.load %arg27[%c1_68, %c36_69] : memref<2x144xf32, #tpu.memory_space<vmem>>, vector<1x9xf32>
    tpu.vector_store %arg27[%c1_68, %c36_69], %125 {strides = array<i32>} : memref<2x144xf32, #tpu.memory_space<vmem>>, vector<1x9xf32>,
    %127 = vector.extract_strided_slice %116 {offsets = [5, 0], sizes = [1, 9], strides = [1, 1]} : vector<16x9xf32> to vector<1x9xf32>
    %c1_70 = arith.constant 1 : index
    %c45_71 = arith.constant 45 : index
    %128 = vector.load %arg27[%c1_70, %c45_71] : memref<2x144xf32, #tpu.memory_space<vmem>>, vector<1x9xf32>
    tpu.vector_store %arg27[%c1_70, %c45_71], %127 {strides = array<i32>} : memref<2x144xf32, #tpu.memory_space<vmem>>, vector<1x9xf32>,
    %129 = vector.extract_strided_slice %116 {offsets = [6, 0], sizes = [1, 9], strides = [1, 1]} : vector<16x9xf32> to vector<1x9xf32>
    %c1_72 = arith.constant 1 : index
    %c54_73 = arith.constant 54 : index
    %130 = vector.load %arg27[%c1_72, %c54_73] : memref<2x144xf32, #tpu.memory_space<vmem>>, vector<1x9xf32>
    tpu.vector_store %arg27[%c1_72, %c54_73], %129 {strides = array<i32>} : memref<2x144xf32, #tpu.memory_space<vmem>>, vector<1x9xf32>,
    %131 = vector.extract_strided_slice %116 {offsets = [7, 0], sizes = [1, 9], strides = [1, 1]} : vector<16x9xf32> to vector<1x9xf32>
    %c1_74 = arith.constant 1 : index
    %c63_75 = arith.constant 63 : index
    %132 = vector.load %arg27[%c1_74, %c63_75] : memref<2x144xf32, #tpu.memory_space<vmem>>, vector<1x9xf32>
    tpu.vector_store %arg27[%c1_74, %c63_75], %131 {strides = array<i32>} : memref<2x144xf32, #tpu.memory_space<vmem>>, vector<1x9xf32>,
    %133 = vector.extract_strided_slice %116 {offsets = [8, 0], sizes = [1, 9], strides = [1, 1]} : vector<16x9xf32> to vector<1x9xf32>
    %c1_76 = arith.constant 1 : index
    %c72_77 = arith.constant 72 : index
    %134 = vector.load %arg27[%c1_76, %c72_77] : memref<2x144xf32, #tpu.memory_space<vmem>>, vector<1x9xf32>
    tpu.vector_store %arg27[%c1_76, %c72_77], %133 {strides = array<i32>} : memref<2x144xf32, #tpu.memory_space<vmem>>, vector<1x9xf32>,
    %135 = vector.extract_strided_slice %116 {offsets = [9, 0], sizes = [1, 9], strides = [1, 1]} : vector<16x9xf32> to vector<1x9xf32>
    %c1_78 = arith.constant 1 : index
    %c81_79 = arith.constant 81 : index
    %136 = vector.load %arg27[%c1_78, %c81_79] : memref<2x144xf32, #tpu.memory_space<vmem>>, vector<1x9xf32>
    tpu.vector_store %arg27[%c1_78, %c81_79], %135 {strides = array<i32>} : memref<2x144xf32, #tpu.memory_space<vmem>>, vector<1x9xf32>,
    %137 = vector.extract_strided_slice %116 {offsets = [10, 0], sizes = [1, 9], strides = [1, 1]} : vector<16x9xf32> to vector<1x9xf32>
    %c1_80 = arith.constant 1 : index
    %c90_81 = arith.constant 90 : index
    %138 = vector.load %arg27[%c1_80, %c90_81] : memref<2x144xf32, #tpu.memory_space<vmem>>, vector<1x9xf32>
    tpu.vector_store %arg27[%c1_80, %c90_81], %137 {strides = array<i32>} : memref<2x144xf32, #tpu.memory_space<vmem>>, vector<1x9xf32>,
    %139 = vector.extract_strided_slice %116 {offsets = [11, 0], sizes = [1, 9], strides = [1, 1]} : vector<16x9xf32> to vector<1x9xf32>
    %c1_82 = arith.constant 1 : index
    %c99_83 = arith.constant 99 : index
    %140 = vector.load %arg27[%c1_82, %c99_83] : memref<2x144xf32, #tpu.memory_space<vmem>>, vector<1x9xf32>
    tpu.vector_store %arg27[%c1_82, %c99_83], %139 {strides = array<i32>} : memref<2x144xf32, #tpu.memory_space<vmem>>, vector<1x9xf32>,
    %141 = vector.extract_strided_slice %116 {offsets = [12, 0], sizes = [1, 9], strides = [1, 1]} : vector<16x9xf32> to vector<1x9xf32>
    %c1_84 = arith.constant 1 : index
    %c108_85 = arith.constant 108 : index
    %142 = vector.load %arg27[%c1_84, %c108_85] : memref<2x144xf32, #tpu.memory_space<vmem>>, vector<1x9xf32>
    tpu.vector_store %arg27[%c1_84, %c108_85], %141 {strides = array<i32>} : memref<2x144xf32, #tpu.memory_space<vmem>>, vector<1x9xf32>,
    %143 = vector.extract_strided_slice %116 {offsets = [13, 0], sizes = [1, 9], strides = [1, 1]} : vector<16x9xf32> to vector<1x9xf32>
    %c1_86 = arith.constant 1 : index
    %c117_87 = arith.constant 117 : index
    %144 = vector.load %arg27[%c1_86, %c117_87] : memref<2x144xf32, #tpu.memory_space<vmem>>, vector<1x9xf32>
    tpu.vector_store %arg27[%c1_86, %c117_87], %143 {strides = array<i32>} : memref<2x144xf32, #tpu.memory_space<vmem>>, vector<1x9xf32>,
    %145 = vector.extract_strided_slice %116 {offsets = [14, 0], sizes = [1, 9], strides = [1, 1]} : vector<16x9xf32> to vector<1x9xf32>
    %c1_88 = arith.constant 1 : index
    %c126_89 = arith.constant 126 : index
    %146 = vector.load %arg27[%c1_88, %c126_89] : memref<2x144xf32, #tpu.memory_space<vmem>>, vector<1x9xf32>
    tpu.vector_store %arg27[%c1_88, %c126_89], %145 {strides = array<i32>} : memref<2x144xf32, #tpu.memory_space<vmem>>, vector<1x9xf32>,
    %147 = vector.extract_strided_slice %116 {offsets = [15, 0], sizes = [1, 9], strides = [1, 1]} : vector<16x9xf32> to vector<1x9xf32>
    %c1_90 = arith.constant 1 : index
    %c135_91 = arith.constant 135 : index
    %148 = vector.load %arg27[%c1_90, %c135_91] : memref<2x144xf32, #tpu.memory_space<vmem>>, vector<1x9xf32>
    tpu.vector_store %arg27[%c1_90, %c135_91], %147 {strides = array<i32>} : memref<2x144xf32, #tpu.memory_space<vmem>>, vector<1x9xf32>,
    %c0_92 = arith.constant 0 : index
    %c0_93 = arith.constant 0 : index
    %149 = vector.load %arg27[%c0_92, %c0_93] : memref<2x144xf32, #tpu.memory_space<vmem>>, vector<2x144xf32>
    %c0_94 = arith.constant 0 : index
    %c0_95 = arith.constant 0 : index
    %150 = vector.load %arg9[%c0_94, %c0_95] : memref<144x128xf32, #tpu.memory_space<vmem>>, vector<144x128xf32>
    %cst_96 = arith.constant dense<0.000000e+00> : vector<2x128xf32>
    %151 = tpu.matmul %149, %150, %cst_96 {dimension_numbers = #tpu.dot_dimension_numbers<[1], [0], [0], [1], [0, 0, 1, 1], [], []>} : vector<2x144xf32>, vector<144x128xf32>, vector<2x128xf32> -> vector<2x128xf32>
    %c0_97 = arith.constant 0 : index
    %c0_98 = arith.constant 0 : index
    %152 = vector.load %arg10[%c0_97, %c0_98] : memref<1x128xf32, #tpu.memory_space<vmem>>, vector<1x128xf32>
    %153 = vector.broadcast %152 : vector<1x128xf32> to vector<2x128xf32>
    %154 = arith.addf %151, %153 : vector<2x128xf32>
    %c2_99 = arith.constant 2 : index
    %155 = memref.load %arg0[%c2_99] : memref<6xf32, #tpu.memory_space<smem>>
    %cst_100 = arith.constant 0.000000e+00 : f32
    %156 = vector.broadcast %cst_100 : f32 to vector<2x128xf32>
    %157 = arith.cmpf ogt, %154, %156 : vector<2x128xf32>
    %158 = vector.broadcast %155 : f32 to vector<2x128xf32>
    %159 = arith.mulf %158, %154 : vector<2x128xf32>
    %160 = arith.select %157, %154, %159 : vector<2x128xi1>, vector<2x128xf32>
    %c0_101 = arith.constant 0 : index
    %c0_102 = arith.constant 0 : index
    %161 = vector.load %arg11[%c0_101, %c0_102] : memref<128x64xf32, #tpu.memory_space<vmem>>, vector<128x64xf32>
    %cst_103 = arith.constant dense<0.000000e+00> : vector<2x64xf32>
    %162 = tpu.matmul %160, %161, %cst_103 {dimension_numbers = #tpu.dot_dimension_numbers<[1], [0], [0], [1], [0, 0, 1, 1], [], []>} : vector<2x128xf32>, vector<128x64xf32>, vector<2x64xf32> -> vector<2x64xf32>
    %c0_104 = arith.constant 0 : index
    %c0_105 = arith.constant 0 : index
    %163 = vector.load %arg12[%c0_104, %c0_105] : memref<1x64xf32, #tpu.memory_space<vmem>>, vector<1x64xf32>
    %164 = vector.broadcast %163 : vector<1x64xf32> to vector<2x64xf32>
    %165 = arith.addf %162, %164 : vector<2x64xf32>
    %c0_106 = arith.constant 0 : index
    %c0_107 = arith.constant 0 : index
    %166 = vector.load %arg2[%c0_106, %c0_107] : memref<2x8xf32, #tpu.memory_space<vmem>>, vector<2x8xf32>
    %c0_108 = arith.constant 0 : index
    %c0_109 = arith.constant 0 : index
    %167 = vector.load %arg13[%c0_108, %c0_109] : memref<64x64xf32, #tpu.memory_space<vmem>>, vector<64x64xf32>
    %cst_110 = arith.constant dense<0.000000e+00> : vector<2x64xf32>
    %168 = tpu.matmul %165, %167, %cst_110 {dimension_numbers = #tpu.dot_dimension_numbers<[1], [0], [0], [1], [0, 0, 1, 1], [], []>} : vector<2x64xf32>, vector<64x64xf32>, vector<2x64xf32> -> vector<2x64xf32>
    %c0_111 = arith.constant 0 : index
    %c0_112 = arith.constant 0 : index
    %169 = vector.load %arg14[%c0_111, %c0_112] : memref<8x64xf32, #tpu.memory_space<vmem>>, vector<8x64xf32>
    %cst_113 = arith.constant dense<0.000000e+00> : vector<2x64xf32>
    %170 = tpu.matmul %166, %169, %cst_113 {dimension_numbers = #tpu.dot_dimension_numbers<[1], [0], [0], [1], [0, 0, 1, 1], [], []>} : vector<2x8xf32>, vector<8x64xf32>, vector<2x64xf32> -> vector<2x64xf32>
    %171 = arith.addf %168, %170 : vector<2x64xf32>
    %c0_114 = arith.constant 0 : index
    %c0_115 = arith.constant 0 : index
    %172 = vector.load %arg15[%c0_114, %c0_115] : memref<1x64xf32, #tpu.memory_space<vmem>>, vector<1x64xf32>
    %173 = vector.broadcast %172 : vector<1x64xf32> to vector<2x64xf32>
    %174 = arith.addf %171, %173 : vector<2x64xf32>
    %175 = vector.extract_strided_slice %174 {offsets = [0, 0], sizes = [2, 32], strides = [1, 1]} : vector<2x64xf32> to vector<2x32xf32>
    %176 = vector.extract_strided_slice %174 {offsets = [0, 32], sizes = [2, 32], strides = [1, 1]} : vector<2x64xf32> to vector<2x32xf32>
    %cst_116 = arith.constant 5.000000e-01 : f32
    %177 = vector.broadcast %cst_116 : f32 to vector<2x32xf32>
    %178 = arith.mulf %177, %176 : vector<2x32xf32>
    %179 = math.exp %178 : vector<2x32xf32>
    %c0_117 = arith.constant 0 : index
    %c0_118 = arith.constant 0 : index
    %180 = vector.load %arg3[%c0_117, %c0_118] : memref<2x32xf32, #tpu.memory_space<vmem>>, vector<2x32xf32>
    %181 = arith.mulf %180, %179 : vector<2x32xf32>
    %182 = arith.addf %175, %181 : vector<2x32xf32>
    %c0_119 = arith.constant 0 : index
    %c0_120 = arith.constant 0 : index
    %183 = vector.load %arg16[%c0_119, %c0_120] : memref<32x72xf32, #tpu.memory_space<vmem>>, vector<32x72xf32>
    %cst_121 = arith.constant dense<0.000000e+00> : vector<2x72xf32>
    %184 = tpu.matmul %182, %183, %cst_121 {dimension_numbers = #tpu.dot_dimension_numbers<[1], [0], [0], [1], [0, 0, 1, 1], [], []>} : vector<2x32xf32>, vector<32x72xf32>, vector<2x72xf32> -> vector<2x72xf32>
    %c0_122 = arith.constant 0 : index
    %c0_123 = arith.constant 0 : index
    %185 = vector.load %arg17[%c0_122, %c0_123] : memref<1x72xf32, #tpu.memory_space<vmem>>, vector<1x72xf32>
    %186 = vector.broadcast %185 : vector<1x72xf32> to vector<2x72xf32>
    %187 = arith.addf %184, %186 : vector<2x72xf32>
    %c0_124 = arith.constant 0 : index
    %c0_125 = arith.constant 0 : index
    %188 = vector.load %arg18[%c0_124, %c0_125] : memref<72x128xf32, #tpu.memory_space<vmem>>, vector<72x128xf32>
    %cst_126 = arith.constant dense<0.000000e+00> : vector<2x128xf32>
    %189 = tpu.matmul %187, %188, %cst_126 {dimension_numbers = #tpu.dot_dimension_numbers<[1], [0], [0], [1], [0, 0, 1, 1], [], []>} : vector<2x72xf32>, vector<72x128xf32>, vector<2x128xf32> -> vector<2x128xf32>
    %c0_127 = arith.constant 0 : index
    %c0_128 = arith.constant 0 : index
    %190 = vector.load %arg19[%c0_127, %c0_128] : memref<1x128xf32, #tpu.memory_space<vmem>>, vector<1x128xf32>
    %191 = vector.broadcast %190 : vector<1x128xf32> to vector<2x128xf32>
    %192 = arith.addf %189, %191 : vector<2x128xf32>
    %c3_129 = arith.constant 3 : index
    %193 = memref.load %arg0[%c3_129] : memref<6xf32, #tpu.memory_space<smem>>
    %cst_130 = arith.constant 0.000000e+00 : f32
    %194 = vector.broadcast %cst_130 : f32 to vector<2x128xf32>
    %195 = arith.cmpf ogt, %192, %194 : vector<2x128xf32>
    %196 = vector.broadcast %193 : f32 to vector<2x128xf32>
    %197 = arith.mulf %196, %192 : vector<2x128xf32>
    %198 = arith.select %195, %192, %197 : vector<2x128xi1>, vector<2x128xf32>
    %c0_131 = arith.constant 0 : index
    %c0_132 = arith.constant 0 : index
    %199 = vector.load %arg20[%c0_131, %c0_132] : memref<128x64xf32, #tpu.memory_space<vmem>>, vector<128x64xf32>
    %cst_133 = arith.constant dense<0.000000e+00> : vector<2x64xf32>
    %200 = tpu.matmul %198, %199, %cst_133 {dimension_numbers = #tpu.dot_dimension_numbers<[1], [0], [0], [1], [0, 0, 1, 1], [], []>} : vector<2x128xf32>, vector<128x64xf32>, vector<2x64xf32> -> vector<2x64xf32>
    %c0_134 = arith.constant 0 : index
    %c0_135 = arith.constant 0 : index
    %201 = vector.load %arg21[%c0_134, %c0_135] : memref<1x64xf32, #tpu.memory_space<vmem>>, vector<1x64xf32>
    %202 = vector.broadcast %201 : vector<1x64xf32> to vector<2x64xf32>
    %203 = arith.addf %200, %202 : vector<2x64xf32>
    %c4_136 = arith.constant 4 : index
    %204 = memref.load %arg0[%c4_136] : memref<6xf32, #tpu.memory_space<smem>>
    %cst_137 = arith.constant 0.000000e+00 : f32
    %205 = vector.broadcast %cst_137 : f32 to vector<2x64xf32>
    %206 = arith.cmpf ogt, %203, %205 : vector<2x64xf32>
    %207 = vector.broadcast %204 : f32 to vector<2x64xf32>
    %208 = arith.mulf %207, %203 : vector<2x64xf32>
    %209 = arith.select %206, %203, %208 : vector<2x64xi1>, vector<2x64xf32>
    %c0_138 = arith.constant 0 : index
    %c0_139 = arith.constant 0 : index
    %210 = vector.load %arg22[%c0_138, %c0_139] : memref<64x32xf32, #tpu.memory_space<vmem>>, vector<64x32xf32>
    %cst_140 = arith.constant dense<0.000000e+00> : vector<2x32xf32>
    %211 = tpu.matmul %209, %210, %cst_140 {dimension_numbers = #tpu.dot_dimension_numbers<[1], [0], [0], [1], [0, 0, 1, 1], [], []>} : vector<2x64xf32>, vector<64x32xf32>, vector<2x32xf32> -> vector<2x32xf32>
    %c0_141 = arith.constant 0 : index
    %c0_142 = arith.constant 0 : index
    %212 = vector.load %arg23[%c0_141, %c0_142] : memref<1x32xf32, #tpu.memory_space<vmem>>, vector<1x32xf32>
    %213 = vector.broadcast %212 : vector<1x32xf32> to vector<2x32xf32>
    %214 = arith.addf %211, %213 : vector<2x32xf32>
    %c5_143 = arith.constant 5 : index
    %215 = memref.load %arg0[%c5_143] : memref<6xf32, #tpu.memory_space<smem>>
    %cst_144 = arith.constant 0.000000e+00 : f32
    %216 = vector.broadcast %cst_144 : f32 to vector<2x32xf32>
    %217 = arith.cmpf ogt, %214, %216 : vector<2x32xf32>
    %218 = vector.broadcast %215 : f32 to vector<2x32xf32>
    %219 = arith.mulf %218, %214 : vector<2x32xf32>
    %220 = arith.select %217, %214, %219 : vector<2x32xi1>, vector<2x32xf32>
    %c0_145 = arith.constant 0 : index
    %c0_146 = arith.constant 0 : index
    %221 = vector.load %arg24[%c0_145, %c0_146] : memref<32x4xf32, #tpu.memory_space<vmem>>, vector<32x4xf32>
    %cst_147 = arith.constant dense<0.000000e+00> : vector<2x4xf32>
    %222 = tpu.matmul %220, %221, %cst_147 {dimension_numbers = #tpu.dot_dimension_numbers<[1], [0], [0], [1], [0, 0, 1, 1], [], []>} : vector<2x32xf32>, vector<32x4xf32>, vector<2x4xf32> -> vector<2x4xf32>
    %c0_148 = arith.constant 0 : index
    %c0_149 = arith.constant 0 : index
    %223 = vector.load %arg25[%c0_148, %c0_149] : memref<1x4xf32, #tpu.memory_space<vmem>>, vector<1x4xf32>
    %224 = vector.broadcast %223 : vector<1x4xf32> to vector<2x4xf32>
    %225 = arith.addf %222, %224 : vector<2x4xf32>
    %c0_150 = arith.constant 0 : index
    %c0_151 = arith.constant 0 : index
    %226 = vector.load %arg26[%c0_150, %c0_151] : memref<2x4xf32, #tpu.memory_space<vmem>>, vector<2x4xf32>
    tpu.vector_store %arg26[%c0_150, %c0_151], %225 {strides = array<i32>} : memref<2x4xf32, #tpu.memory_space<vmem>>, vector<2x4xf32>,
    return
  }
}

</mosaic_0001>

<bundles_post_ra>
// kernel: vae_mpnet_forward.1
= control target key start
LH: loop header
LB: loop body
LE: loop exit
PB: predicated region body
PF: predicated region fallthrough
CT: control target
= control target key end

     0   :  { %s5492_s0 = inlined_call_operand.vmem [shape: f32[6], index: 0, kind: input, shape index: {}]   ;;  %s5493_s1 = inlined_call_operand.vmem [shape: f32[36,392], index: 1, kind: input, shape index: {}]   ;;  %s5494_s2 = inlined_call_operand.vmem [shape: f32[2,8], index: 2, kind: input, shape index: {}]   ;;  %s5495_s3 = inlined_call_operand.vmem [shape: f32[2,32], index: 3, kind: input, shape index: {}]   ;;  %s5496_s4 = inlined_call_operand.vmem [shape: f32[392,648], index: 4, kind: input, shape index: {}]   ;;  %s5497_s5 = inlined_call_operand.vmem [shape: f32[8,36], index: 5, kind: input, shape index: {}]   ;;  %s5498_s6 = inlined_call_operand.vmem [shape: f32[8,1], index: 6, kind: input, shape index: {}]   ;;  %s5499_s7 = inlined_call_operand.vmem [shape: f32[9,16,8], index: 7, kind: input, shape index: {}]   ;;  %s5500_s8 = inlined_call_operand.vmem [shape: f32[16,1], index: 8, kind: input, shape index: {}]   ;;  %s5501_s9 = inlined_call_operand.vmem [shape: f32[144,128], index: 9, kind: input, shape index: {}]   ;;  %s5502_s10 = inlined_call_operand.vmem [shape: f32[1,128], index: 10, kind: input, shape index: {}]   ;;  %s5503_s11 = inlined_call_operand.vmem [shape: f32[128,64], index: 11, kind: input, shape index: {}]   ;;  %s5504_s12 = inlined_call_operand.vmem [shape: f32[1,64], index: 12, kind: input, shape index: {}]   ;;  %s5505_s13 = inlined_call_operand.vmem [shape: f32[64,64], index: 13, kind: input, shape index: {}]   ;;  %s5506_s14 = inlined_call_operand.vmem [shape: f32[8,64], index: 14, kind: input, shape index: {}]   ;;  %s5507_s15 = inlined_call_operand.vmem [shape: f32[1,64], index: 15, kind: input, shape index: {}]   ;;  %s5508_s16 = inlined_call_operand.vmem [shape: f32[32,72], index: 16, kind: input, shape index: {}]   ;;  %s5509_s17 = inlined_call_operand.vmem [shape: f32[1,72], index: 17, kind: input, shape index: {}]   ;;  %s5510_s18 = inlined_call_operand.vmem [shape: f32[72,128], index: 18, kind: input, shape index: {}]   ;;  %s5511_s19 = inlined_call_operand.vmem [shape: f32[1,128], index: 19, kind: input, shape index: {}]   ;;  %s5512_s20 = inlined_call_operand.vmem [shape: f32[128,64], index: 20, kind: input, shape index: {}]   ;;  %s5513_s21 = inlined_call_operand.vmem [shape: f32[1,64], index: 21, kind: input, shape index: {}]   ;;  %s5514_s22 = inlined_call_operand.vmem [shape: f32[64,32], index: 22, kind: input, shape index: {}]   ;;  %s5515_s23 = inlined_call_operand.vmem [shape: f32[1,32], index: 23, kind: input, shape index: {}]   ;;  %s5516_s24 = inlined_call_operand.vmem [shape: f32[32,4], index: 24, kind: input, shape index: {}]   ;;  %s5517_s25 = inlined_call_operand.vmem [shape: f32[1,4], index: 25, kind: input, shape index: {}]   ;;  %s5518_s26 = inlined_call_operand.hbm [shape: f32[2,4], index: 26, kind: output, shape index: {}]  }
   0x1   :  { %5525 = sst [smem:[#allocation9_spill]] %s5492_s0 }
   0x2   :  { %5526 = sst [smem:[#allocation10_spill]] %s5493_s1 }
   0x3   :  { %5527 = sst [smem:[#allocation11_spill]] %s5494_s2 }
   0x4   :  { %5528 = sst [smem:[#allocation12_spill]] %s5495_s3 }
   0x5   :  { %5529 = sst [smem:[#allocation13_spill]] %s5496_s4 }
   0x6   :  { %5530 = sst [smem:[#allocation14_spill]] %s5497_s5 }
   0x7   :  { %5531 = sst [smem:[#allocation15_spill]] %s5498_s6 }
   0x8   :  { %5532 = sst [smem:[#allocation16_spill]] %s5499_s7 }
   0x9   :  { %5533 = sst [smem:[#allocation17_spill]] %s5500_s8 }
   0xa   :  { %5534 = sst [smem:[#allocation18_spill]] %s5501_s9 }
   0xb   :  { %5535 = sst [smem:[#allocation19_spill]] %s5502_s10 }
   0xc   :  { %31 = vsyncpa [#allocation5], 0 }
   0xd   :  { %32 = vsyncpa [#allocation4], 0  ;;  %s5536_s7 = sld [smem:[#allocation9_spill]] }
  0x13   :  { %s39_s28 = sshll.u32 %s5536_s7, 4  ;;  %s40_s28 = int_to_ptr.vmem [resolvable:$true] %s39_s28 }
  0x14   :  { %s3786_s8 = scalar_lea.vmem %s40_s28, 16  ;;  %p3791_p1 = scmp.lt.s32.totalorder %s40_s28, %s40_s28 }
  0x15   :  { %p3787_p0 = scmp.ne.s32.totalorder %s40_s28, %s3786_s8  ;;  %p3792_p2 = scmp.lt.s32.totalorder %s3786_s8, %s3786_s8 }
  0x17   :  { %p3793_p3 = por %p3792_p2, %p3791_p1 }
  0x19   :  { %p3794_p4 = pnand %p3793_p3, %p3787_p0 }
  0x1b   :  { %3797 = shalt.err (!%p3794_p4)
}
  0x1c   :  { %s3824_s4 = smov [#allocation3]  }
  0x1d   :  { %42 = dma.vmem_to_smem %s40_s28, 16, %s3824_s4, [#allocation5]  }
  0x1e   :  { %3820 = dma.done.wait [#allocation5], 16  }
  0x1f   :  { %3821 = vsyncadd [#allocation5], 4294967280 }
  0x20   :  { %96 = sfence }
  0x21   :  { %s5537_s9 = sld [smem:[#allocation10_spill]]  ;;  %v3825_v7 = vmov 0.0   ;;  %v3826_v13 = vmov 0   ;;  %vm128_vm0 = vcmask 1043456   ;;  %s5538_s8 = sld [smem:[#allocation15_spill]]  ;;  %vm124_vm1 = vcmask 293888  }
  0x22   :  { %205 = vmatprep.mubr.f32.mxu0 %v3825_v7  ;;  %276 = vmatprep.mubr.f32.mxu1 %v3825_v7  ;;  %s5539_s0 = sld [smem:[#allocation13_spill]]  ;;  %s5540_s27 = sld [smem:[#allocation14_spill]]  ;;  %vm591_vm5 = vcmask 64512   ;;  %vm1032_vm7 = vcmask 457728   ;;  %vm1294_vm8 = vcmask 326656   ;;  %vm1477_vm9 = vcmask 195584  }
  0x23   :  { %3782 = vset.pattern.permute.xlu0 %v3826_v13  ;;  %3783 = vset.pattern.permute.xlu1 %v3826_v13  ;;  %s283_s2 = sld [smem:[#allocation3]]  ;;  %s3827_s3 = smov 56   ;;  %vm1753_vm10 = vcmask 523264   ;;  %vm1881_vm13 = vcmask 65536   ;;  %vm1896_vm14 = vcmask 139336   ;;  %vm1902_vm15 = vcmask 213136  }
  0x24   :  { %s3828_s7 = smov 40   ;;  %s5524_s28 = smov 96  }
  0x25   :  { %s3832_s4 = smov 8   ;;  %s3833_s29 = smov 80  }
  0x26   :  { %s5542_s5 = sld [smem:[#allocation17_spill]]  ;;  %s2976_s30 = sld [smem:[#allocation3 + $0x1]] }
  0x27   :  { %v99_v0 = vld [vmem:[%s5537_s9 + $0x8] sm:$0xff]  ;;  %v101_v2 = vld [vmem:[%s5537_s9 + $0x18] sm:$0xff]  ;;  %v98_v5 = vld [vmem:[%s5537_s9] sm:$0xff]  ;;  %s3839_s10 = smov 72   ;;  %s3840_s6 = smov 92  }
  0x28   :  { %v103_v1 = vld [vmem:[%s5537_s9 + $0x28] sm:$0xff]  ;;  %v105_v4 = vld [vmem:[%s5537_s9 + $0x38] sm:$0xff]  ;;  %v102_v6 = vld [vmem:[%s5537_s9 + $0x20] sm:$0xff]  ;;  %s3841_s1 = smov 54  }
  0x29   :  { %v3299_v3 = vpack.c.bf16 %v103_v1, %v99_v0  ;;  %v3307_v8 = vpack.c.bf16 %v105_v4, %v101_v2  ;;  %v3301_v9 = vpack.c.bf16 %v102_v6, %v98_v5  ;;  %v100_v10 = vld [vmem:[%s5537_s9 + $0x10] sm:$0xff]  ;;  %v107_v12 = vld [vmem:[%s5537_s9 + $0x48] sm:$0xff]  ;;  %v109_v16 = vld [vmem:[%s5537_s9 + $0x58] sm:$0xff] }
  0x2a   :  { %v104_v11 = vld [vmem:[%s5537_s9 + $0x30] sm:$0xff]  ;;  %v111_v15 = vld [vmem:[%s5537_s9 + $0x68] sm:$0xff]  ;;  %v113_v17 = vld [vmem:[%s5537_s9 + $0x78] sm:$0xff] }
  0x2b   :  { %3300 = vmatprep.subr.bf16.mxu0 %v3299_v3  ;;  %v3309_v14 = vpack.c.bf16 %v104_v11, %v100_v10  ;;  %3308 = vmatprep.subr.bf16.mxu1 %v3307_v8  ;;  %v3303_v18 = vpack.c.bf16 %v111_v15, %v107_v12  ;;  %v3311_v19 = vpack.c.bf16 %v113_v17, %v109_v16  ;;  %v106_v20 = vld [vmem:[%s5537_s9 + $0x40] sm:$0xff]  ;;  %v108_v22 = vld [vmem:[%s5537_s9 + $0x50] sm:$0xff]  ;;  %v115_v26 = vld [vmem:[%s5537_s9 + $0x88] sm:$0xf] }
  0x2c   :  { %3302 = vmatpush1.bf16.msra.mxu0 %v3301_v9  ;;  %v110_v21 = vld [vmem:[%s5537_s9 + $0x60] sm:$0xff]  ;;  %v112_v24 = vld [vmem:[%s5537_s9 + $0x70] sm:$0xff]  ;;  %v117_v27 = vld [vmem:[%s5537_s9 + $0x98] sm:$0xf] }
  0x2d   :  { %3310 = vmatpush1.bf16.msra.mxu1 %v3309_v14  ;;  %v3305_v23 = vpack.c.bf16 %v110_v21, %v106_v20  ;;  %3304 = vmatprep.subr.bf16.mxu0 %v3303_v18  ;;  %v3313_v25 = vpack.c.bf16 %v112_v24, %v108_v22  ;;  %v114_v28 = vld [vmem:[%s5537_s9 + $0x80] sm:$0xf]  ;;  %v298_v30 = vld [vmem:[%s5539_s0 + $0x8] sm:$0xff]  ;;  %v304_v31 = vld [vmem:[%s5539_s0 + $0x38] sm:$0xff] }
  0x2e   :  { %3312 = vmatprep.subr.bf16.mxu1 %v3311_v19  ;;  %v118_v29 = vld [vmem:[%s5538_s8] sm:$0xff]  ;;  %v116_v32 = vld [vmem:[%s5537_s9 + $0x90] sm:$0xf]  ;;  %v300_v34 = vld [vmem:[%s5539_s0 + $0x18] sm:$0xff]  ;;  %v3315_v40 = vpack.c.bf16 %v304_v31, %v298_v30  ;;  %s3831_s8 = smov 24   ;;  %s3834_s9 = smov 64  }
  0x2f   :  { %v97_v33 = vld [vmem:[%s5540_s27] sm:$0xff]  ;;  %121 = vperm.xlu0 %3782, %v118_v29   ;;  %v306_v35 = vld [vmem:[%s5539_s0 + $0x48] sm:$0xff]  ;;  %v303_v37 = vld [vmem:[%s5539_s0 + $0x30] sm:$0xff]  ;;  %s5541_s27 = sld [smem:[#allocation16_spill]] }
  0x30   :  { %3306 = vmatpush1.bf16.msra.mxu0 %v3305_v23  ;;  %v297_v36 = vld [vmem:[%s5539_s0] sm:$0xff]  ;;  %v299_v38 = vld [vmem:[%s5539_s0 + $0x10] sm:$0xff]  ;;  %v310_v41 = vld [vmem:[%s5539_s0 + $0x68] sm:$0xff]  ;;  %v3411_v44 = vpack.c.bf16 %v306_v35, %v300_v34 }
  0x31   :  { %3314 = vmatpush1.bf16.msra.mxu1 %v3313_v25  ;;  %2933 = vmatprep.subr.msk.mxu0 %vm128_vm0, %v115_v26  ;;  %v305_v39 = vld [vmem:[%s5539_s0 + $0x40] sm:$0xff]  ;;  %v316_v42 = vld [vmem:[%s5539_s0 + $0x98] sm:$0xff]  ;;  %v3317_v45 = vpack.c.bf16 %v303_v37, %v297_v36  ;;  %v318_v46 = vld [vmem:[%s5539_s0 + $0xa8] sm:$0xff] }
  0x32   :  { %2936 = vmatprep.subr.msk.mxu1 %vm128_vm0, %v117_v27  ;;  %v312_v43 = vld [vmem:[%s5539_s0 + $0x78] sm:$0xff]  ;;  %v3413_v47 = vpack.c.bf16 %v305_v39, %v299_v38  ;;  %v3319_v48 = vpack.c.bf16 %v316_v42, %v310_v41  ;;  %v309_v49 = vld [vmem:[%s5539_s0 + $0x60] sm:$0xff]  ;;  %v315_v50 = vld [vmem:[%s5539_s0 + $0x90] sm:$0xff] }
  0x33   :  { %v311_v51 = vld [vmem:[%s5539_s0 + $0x70] sm:$0xff]  ;;  %v3415_v52 = vpack.c.bf16 %v318_v46, %v312_v43  ;;  %v317_v53 = vld [vmem:[%s5539_s0 + $0xa0] sm:$0xff]  ;;  %v322_v54 = vld [vmem:[%s5539_s0 + $0xc8] sm:$0xff]  ;;  %v3321_v58 = vpack.c.bf16 %v315_v50, %v309_v49 }
  0x34   :  { %2934 = vmatpush1.msk.msra.mxu0 %vm128_vm0, %v114_v28  ;;  %v328_v55 = vld [vmem:[%s5539_s0 + $0xf8] sm:$0xff]  ;;  %v330_v57 = vld [vmem:[%s5539_s0 + $0x108] sm:$0xff]  ;;  %v3417_v59 = vpack.c.bf16 %v317_v53, %v311_v51  ;;  %v321_v61 = vld [vmem:[%s5539_s0 + $0xc0] sm:$0xff] }
  0x35   :  { %2937 = vmatpush1.msk.msra.mxu1 %vm128_vm0, %v116_v32  ;;  %2935 = vmatmul.mubr.msk.f32.vlgmr.msra.gmra.mrb[0].mxu0 %vm124_vm1, %v97_v33  ;;  %v324_v56 = vld [vmem:[%s5539_s0 + $0xd8] sm:$0xff]  ;;  %v3323_v60 = vpack.c.bf16 %v328_v55, %v322_v54  ;;  %v327_v62 = vld [vmem:[%s5539_s0 + $0xf0] sm:$0xff]  ;;  %v329_v1 = vld [vmem:[%s5539_s0 + $0x100] sm:$0xff]  ;;  %vm1909_vm0 = vcmask 286936  }
  0x36   :  { %2938 = vmatmul.mubr.msk.f32.vlgmr.msra.gmra.mrb[0].mxu1 %vm124_vm1, %v97_v33  ;;  %3316 = vmatprep.subr.bf16.mxu0 %v3315_v40  ;;  %v323_v63 = vld [vmem:[%s5539_s0 + $0xd0] sm:$0xff]  ;;  %v3419_v0 = vpack.c.bf16 %v330_v57, %v324_v56  ;;  %v334_v2 = vld [vmem:[%s5539_s0 + $0x128] sm:$0xff]  ;;  %v340_v3 = vld [vmem:[%s5539_s0 + $0x158] sm:$0xff]  ;;  %v3325_v6 = vpack.c.bf16 %v327_v62, %v321_v61  ;;  %vm1922_vm1 = vcmask 360736  }
  0x37   :  { %3412 = vmatprep.subr.bf16.mxu1 %v3411_v44  ;;  %3318 = vmatpush1.bf16.msra.mxu0 %v3317_v45  ;;  %v336_v4 = vld [vmem:[%s5539_s0 + $0x138] sm:$0xff]  ;;  %v342_v5 = vld [vmem:[%s5539_s0 + $0x168] sm:$0xff]  ;;  %v3421_v8 = vpack.c.bf16 %v329_v1, %v323_v63  ;;  %v3327_v9 = vpack.c.bf16 %v340_v3, %v334_v2  ;;  %v333_v10 = vld [vmem:[%s5539_s0 + $0x120] sm:$0xff] }
  0x38   :  { %3414 = vmatpush1.bf16.msra.mxu1 %v3413_v47  ;;  %3320 = vmatprep.subr.bf16.mxu0 %v3319_v48  ;;  %v339_v11 = vld [vmem:[%s5539_s0 + $0x150] sm:$0xff]  ;;  %v3423_v13 = vpack.c.bf16 %v342_v5, %v336_v4  ;;  %v341_v14 = vld [vmem:[%s5539_s0 + $0x160] sm:$0xff]  ;;  %v346_v15 = vld [vmem:[%s5539_s0 + $0x188] sm:$0xff] }
  0x39   :  { %3416 = vmatprep.subr.bf16.mxu1 %v3415_v52  ;;  %v335_v12 = vld [vmem:[%s5539_s0 + $0x130] sm:$0xff]  ;;  %v352_v16 = vld [vmem:[%s5539_s0 + $0x1b8] sm:$0xff]  ;;  %v354_v18 = vld [vmem:[%s5539_s0 + $0x1c8] sm:$0xff]  ;;  %v3329_v19 = vpack.c.bf16 %v339_v11, %v333_v10 }
  0x3a   :  { %v348_v17 = vld [vmem:[%s5539_s0 + $0x198] sm:$0xff]  ;;  %v3425_v20 = vpack.c.bf16 %v341_v14, %v335_v12  ;;  %v3331_v21 = vpack.c.bf16 %v352_v16, %v346_v15  ;;  %v345_v22 = vld [vmem:[%s5539_s0 + $0x180] sm:$0xff]  ;;  %v351_v23 = vld [vmem:[%s5539_s0 + $0x1b0] sm:$0xff] }
  0x3b   :  { %3322 = vmatpush1.bf16.msra.mxu0 %v3321_v58  ;;  %v347_v24 = vld [vmem:[%s5539_s0 + $0x190] sm:$0xff]  ;;  %v3427_v25 = vpack.c.bf16 %v354_v18, %v348_v17  ;;  %v353_v26 = vld [vmem:[%s5539_s0 + $0x1c0] sm:$0xff]  ;;  %v358_v27 = vld [vmem:[%s5539_s0 + $0x1e8] sm:$0xff]  ;;  %v3333_v31 = vpack.c.bf16 %v351_v23, %v345_v22 }
  0x3c   :  { %3418 = vmatpush1.bf16.msra.mxu1 %v3417_v59  ;;  %3324 = vmatprep.subr.bf16.mxu0 %v3323_v60  ;;  %v364_v28 = vld [vmem:[%s5539_s0 + $0x218] sm:$0xff]  ;;  %v366_v30 = vld [vmem:[%s5539_s0 + $0x228] sm:$0xff]  ;;  %v3429_v32 = vpack.c.bf16 %v353_v26, %v347_v24  ;;  %v357_v34 = vld [vmem:[%s5539_s0 + $0x1e0] sm:$0xff] }
  0x3d   :  { %3420 = vmatprep.subr.bf16.mxu1 %v3419_v0  ;;  %v360_v29 = vld [vmem:[%s5539_s0 + $0x1f8] sm:$0xff]  ;;  %v3335_v33 = vpack.c.bf16 %v364_v28, %v358_v27  ;;  %v363_v35 = vld [vmem:[%s5539_s0 + $0x210] sm:$0xff]  ;;  %v365_v38 = vld [vmem:[%s5539_s0 + $0x220] sm:$0xff] }
  0x3e   :  { %v359_v36 = vld [vmem:[%s5539_s0 + $0x1f0] sm:$0xff]  ;;  %v3431_v37 = vpack.c.bf16 %v366_v30, %v360_v29  ;;  %v370_v39 = vld [vmem:[%s5539_s0 + $0x248] sm:$0xff]  ;;  %v376_v40 = vld [vmem:[%s5539_s0 + $0x278] sm:$0xff]  ;;  %v3337_v43 = vpack.c.bf16 %v363_v35, %v357_v34 }
  0x3f   :  { %3326 = vmatpush1.bf16.msra.mxu0 %v3325_v6  ;;  %v372_v41 = vld [vmem:[%s5539_s0 + $0x258] sm:$0xff]  ;;  %v378_v42 = vld [vmem:[%s5539_s0 + $0x288] sm:$0xff]  ;;  %v3433_v44 = vpack.c.bf16 %v365_v38, %v359_v36  ;;  %v3339_v45 = vpack.c.bf16 %v376_v40, %v370_v39  ;;  %v369_v46 = vld [vmem:[%s5539_s0 + $0x240] sm:$0xff] }
  0x40   :  { %3422 = vmatpush1.bf16.msra.mxu1 %v3421_v8  ;;  %3328 = vmatprep.subr.bf16.mxu0 %v3327_v9  ;;  %v375_v47 = vld [vmem:[%s5539_s0 + $0x270] sm:$0xff]  ;;  %v3435_v49 = vpack.c.bf16 %v378_v42, %v372_v41  ;;  %v377_v50 = vld [vmem:[%s5539_s0 + $0x280] sm:$0xff]  ;;  %v382_v51 = vld [vmem:[%s5539_s0 + $0x2a8] sm:$0xff] }
  0x41   :  { %3424 = vmatprep.subr.bf16.mxu1 %v3423_v13  ;;  %v371_v48 = vld [vmem:[%s5539_s0 + $0x250] sm:$0xff]  ;;  %v388_v52 = vld [vmem:[%s5539_s0 + $0x2d8] sm:$0xff]  ;;  %v390_v54 = vld [vmem:[%s5539_s0 + $0x2e8] sm:$0xff]  ;;  %v3341_v55 = vpack.c.bf16 %v375_v47, %v369_v46 }
  0x42   :  { %v384_v53 = vld [vmem:[%s5539_s0 + $0x2b8] sm:$0xff]  ;;  %v3437_v56 = vpack.c.bf16 %v377_v50, %v371_v48  ;;  %v3343_v57 = vpack.c.bf16 %v388_v52, %v382_v51  ;;  %v381_v58 = vld [vmem:[%s5539_s0 + $0x2a0] sm:$0xff]  ;;  %v387_v59 = vld [vmem:[%s5539_s0 + $0x2d0] sm:$0xff] }
  0x43   :  { %3330 = vmatpush1.bf16.msra.mxu0 %v3329_v19  ;;  %v383_v60 = vld [vmem:[%s5539_s0 + $0x2b0] sm:$0xff]  ;;  %v3439_v61 = vpack.c.bf16 %v390_v54, %v384_v53  ;;  %v389_v62 = vld [vmem:[%s5539_s0 + $0x2e0] sm:$0xff]  ;;  %v394_v63 = vld [vmem:[%s5539_s0 + $0x308] sm:$0xff]  ;;  %v3345_v3 = vpack.c.bf16 %v387_v59, %v381_v58 }
  0x44   :  { %3426 = vmatpush1.bf16.msra.mxu1 %v3425_v20  ;;  %3332 = vmatprep.subr.bf16.mxu0 %v3331_v21  ;;  %v400_v0 = vld [vmem:[%s5539_s0 + $0x338] sm:$0xff]  ;;  %v402_v2 = vld [vmem:[%s5539_s0 + $0x348] sm:$0xff]  ;;  %v3441_v4 = vpack.c.bf16 %v389_v62, %v383_v60  ;;  %v393_v6 = vld [vmem:[%s5539_s0 + $0x300] sm:$0xff] }
  0x45   :  { %3428 = vmatprep.subr.bf16.mxu1 %v3427_v25  ;;  %v396_v1 = vld [vmem:[%s5539_s0 + $0x318] sm:$0xff]  ;;  %v3347_v5 = vpack.c.bf16 %v400_v0, %v394_v63  ;;  %v399_v8 = vld [vmem:[%s5539_s0 + $0x330] sm:$0xff]  ;;  %v401_v11 = vld [vmem:[%s5539_s0 + $0x340] sm:$0xff] }
  0x46   :  { %v395_v9 = vld [vmem:[%s5539_s0 + $0x310] sm:$0xff]  ;;  %v3443_v10 = vpack.c.bf16 %v402_v2, %v396_v1  ;;  %v406_v12 = vld [vmem:[%s5539_s0 + $0x368] sm:$0xff]  ;;  %v412_v13 = vld [vmem:[%s5539_s0 + $0x398] sm:$0xff]  ;;  %v3349_v16 = vpack.c.bf16 %v399_v8, %v393_v6 }
  0x47   :  { %3334 = vmatpush1.bf16.msra.mxu0 %v3333_v31  ;;  %v408_v14 = vld [vmem:[%s5539_s0 + $0x378] sm:$0xff]  ;;  %v414_v15 = vld [vmem:[%s5539_s0 + $0x3a8] sm:$0xff]  ;;  %v3445_v17 = vpack.c.bf16 %v401_v11, %v395_v9  ;;  %v3351_v18 = vpack.c.bf16 %v412_v13, %v406_v12  ;;  %v405_v19 = vld [vmem:[%s5539_s0 + $0x360] sm:$0xff] }
  0x48   :  { %3430 = vmatpush1.bf16.msra.mxu1 %v3429_v32  ;;  %3336 = vmatprep.subr.bf16.mxu0 %v3335_v33  ;;  %v411_v20 = vld [vmem:[%s5539_s0 + $0x390] sm:$0xff]  ;;  %v3447_v22 = vpack.c.bf16 %v414_v15, %v408_v14  ;;  %v413_v23 = vld [vmem:[%s5539_s0 + $0x3a0] sm:$0xff]  ;;  %v418_v24 = vld [vmem:[%s5539_s0 + $0x3c8] sm:$0xff] }
  0x49   :  { %3432 = vmatprep.subr.bf16.mxu1 %v3431_v37  ;;  %v407_v21 = vld [vmem:[%s5539_s0 + $0x370] sm:$0xff]  ;;  %v424_v25 = vld [vmem:[%s5539_s0 + $0x3f8] sm:$0xff]  ;;  %v426_v27 = vld [vmem:[%s5539_s0 + $0x408] sm:$0xff]  ;;  %v3353_v28 = vpack.c.bf16 %v411_v20, %v405_v19 }
  0x4a   :  { %v420_v26 = vld [vmem:[%s5539_s0 + $0x3d8] sm:$0xff]  ;;  %v3449_v29 = vpack.c.bf16 %v413_v23, %v407_v21  ;;  %v3355_v30 = vpack.c.bf16 %v424_v25, %v418_v24  ;;  %v417_v31 = vld [vmem:[%s5539_s0 + $0x3c0] sm:$0xff]  ;;  %v423_v32 = vld [vmem:[%s5539_s0 + $0x3f0] sm:$0xff] }
  0x4b   :  { %3338 = vmatpush1.bf16.msra.mxu0 %v3337_v43  ;;  %v419_v33 = vld [vmem:[%s5539_s0 + $0x3d0] sm:$0xff]  ;;  %v3451_v34 = vpack.c.bf16 %v426_v27, %v420_v26  ;;  %v425_v35 = vld [vmem:[%s5539_s0 + $0x400] sm:$0xff]  ;;  %v430_v36 = vld [vmem:[%s5539_s0 + $0x428] sm:$0xff]  ;;  %v3357_v40 = vpack.c.bf16 %v423_v32, %v417_v31 }
  0x4c   :  { %3434 = vmatpush1.bf16.msra.mxu1 %v3433_v44  ;;  %3340 = vmatprep.subr.bf16.mxu0 %v3339_v45  ;;  %v436_v37 = vld [vmem:[%s5539_s0 + $0x458] sm:$0xff]  ;;  %v438_v39 = vld [vmem:[%s5539_s0 + $0x468] sm:$0xff]  ;;  %v3453_v41 = vpack.c.bf16 %v425_v35, %v419_v33  ;;  %v429_v43 = vld [vmem:[%s5539_s0 + $0x420] sm:$0xff] }
  0x4d   :  { %3436 = vmatprep.subr.bf16.mxu1 %v3435_v49  ;;  %v432_v38 = vld [vmem:[%s5539_s0 + $0x438] sm:$0xff]  ;;  %v3359_v42 = vpack.c.bf16 %v436_v37, %v430_v36  ;;  %v435_v44 = vld [vmem:[%s5539_s0 + $0x450] sm:$0xff]  ;;  %v437_v47 = vld [vmem:[%s5539_s0 + $0x460] sm:$0xff] }
  0x4e   :  { %v431_v45 = vld [vmem:[%s5539_s0 + $0x430] sm:$0xff]  ;;  %v3455_v46 = vpack.c.bf16 %v438_v39, %v432_v38  ;;  %v442_v48 = vld [vmem:[%s5539_s0 + $0x488] sm:$0xff]  ;;  %v448_v49 = vld [vmem:[%s5539_s0 + $0x4b8] sm:$0xff]  ;;  %v3361_v52 = vpack.c.bf16 %v435_v44, %v429_v43  ;;  %v4468_v43 = vstv %s283_s2  ;;  %s3835_s2 = smov 119  }
  0x4f   :  { %3342 = vmatpush1.bf16.msra.mxu0 %v3341_v55  ;;  %v444_v50 = vld [vmem:[%s5539_s0 + $0x498] sm:$0xff]  ;;  %v450_v51 = vld [vmem:[%s5539_s0 + $0x4c8] sm:$0xff]  ;;  %v3457_v53 = vpack.c.bf16 %v437_v47, %v431_v45  ;;  %v3363_v54 = vpack.c.bf16 %v448_v49, %v442_v48  ;;  %v441_v55 = vld [vmem:[%s5539_s0 + $0x480] sm:$0xff] }
  0x50   :  { %3438 = vmatpush1.bf16.msra.mxu1 %v3437_v56  ;;  %3344 = vmatprep.subr.bf16.mxu0 %v3343_v57  ;;  %v447_v56 = vld [vmem:[%s5539_s0 + $0x4b0] sm:$0xff]  ;;  %v3459_v58 = vpack.c.bf16 %v450_v51, %v444_v50  ;;  %v449_v59 = vld [vmem:[%s5539_s0 + $0x4c0] sm:$0xff]  ;;  %v454_v60 = vld [vmem:[%s5539_s0 + $0x4e8] sm:$0xff] }
  0x51   :  { %3440 = vmatprep.subr.bf16.mxu1 %v3439_v61  ;;  %v443_v57 = vld [vmem:[%s5539_s0 + $0x490] sm:$0xff]  ;;  %v460_v61 = vld [vmem:[%s5539_s0 + $0x518] sm:$0xff]  ;;  %v462_v63 = vld [vmem:[%s5539_s0 + $0x528] sm:$0xff]  ;;  %v3365_v0 = vpack.c.bf16 %v447_v56, %v441_v55 }
  0x52   :  { %v456_v62 = vld [vmem:[%s5539_s0 + $0x4f8] sm:$0xff]  ;;  %v3461_v1 = vpack.c.bf16 %v449_v59, %v443_v57  ;;  %v3367_v2 = vpack.c.bf16 %v460_v61, %v454_v60  ;;  %v461_v8 = vld [vmem:[%s5539_s0 + $0x520] sm:$0xff]  ;;  %v466_v9 = vld [vmem:[%s5539_s0 + $0x548] sm:$0xff] }
  0x53   :  { %3346 = vmatpush1.bf16.msra.mxu0 %v3345_v3  ;;  %v453_v3 = vld [vmem:[%s5539_s0 + $0x4e0] sm:$0xff]  ;;  %v3463_v6 = vpack.c.bf16 %v462_v63, %v456_v62  ;;  %v468_v11 = vld [vmem:[%s5539_s0 + $0x558] sm:$0xff]  ;;  %v474_v12 = vld [vmem:[%s5539_s0 + $0x588] sm:$0xff] }
  0x54   :  { %3442 = vmatpush1.bf16.msra.mxu1 %v3441_v4  ;;  %3348 = vmatprep.subr.bf16.mxu0 %v3347_v5  ;;  %v459_v4 = vld [vmem:[%s5539_s0 + $0x510] sm:$0xff]  ;;  %v473_v21 = vld [vmem:[%s5539_s0 + $0x580] sm:$0xff]  ;;  %v478_v23 = vld [vmem:[%s5539_s0 + $0x5a8] sm:$0xff] }
  0x55   :  { %3444 = vmatprep.subr.bf16.mxu1 %v3443_v10  ;;  %v455_v5 = vld [vmem:[%s5539_s0 + $0x4f0] sm:$0xff]  ;;  %v472_v10 = vld [vmem:[%s5539_s0 + $0x578] sm:$0xff]  ;;  %v3369_v13 = vpack.c.bf16 %v459_v4, %v453_v3  ;;  %v486_v27 = vld [vmem:[%s5539_s0 + $0x5e8] sm:$0xff] }
  0x56   :  { %v3465_v14 = vpack.c.bf16 %v461_v8, %v455_v5  ;;  %v3371_v15 = vpack.c.bf16 %v472_v10, %v466_v9  ;;  %v467_v19 = vld [vmem:[%s5539_s0 + $0x550] sm:$0xff]  ;;  %v484_v24 = vld [vmem:[%s5539_s0 + $0x5d8] sm:$0xff]  ;;  %v485_v33 = vld [vmem:[%s5539_s0 + $0x5e0] sm:$0xff] }
  0x57   :  { %3350 = vmatpush1.bf16.msra.mxu0 %v3349_v16  ;;  %v3467_v16 = vpack.c.bf16 %v474_v12, %v468_v11  ;;  %v480_v25 = vld [vmem:[%s5539_s0 + $0x5b8] sm:$0xff]  ;;  %v3375_v26 = vpack.c.bf16 %v484_v24, %v478_v23  ;;  %v479_v32 = vld [vmem:[%s5539_s0 + $0x5b0] sm:$0xff]  ;;  %v490_v35 = vld [vmem:[%s5539_s0 + $0x608] sm:$0xff] }
  0x58   :  { %3446 = vmatpush1.bf16.msra.mxu1 %v3445_v17  ;;  %3352 = vmatprep.subr.bf16.mxu0 %v3351_v18  ;;  %v465_v17 = vld [vmem:[%s5539_s0 + $0x540] sm:$0xff]  ;;  %v471_v18 = vld [vmem:[%s5539_s0 + $0x570] sm:$0xff]  ;;  %v496_v36 = vld [vmem:[%s5539_s0 + $0x638] sm:$0xff] }
  0x59   :  { %3448 = vmatprep.subr.bf16.mxu1 %v3447_v22  ;;  %v3373_v20 = vpack.c.bf16 %v471_v18, %v465_v17  ;;  %v3469_v22 = vpack.c.bf16 %v473_v21, %v467_v19  ;;  %v492_v37 = vld [vmem:[%s5539_s0 + $0x618] sm:$0xff]  ;;  %v3379_v38 = vpack.c.bf16 %v496_v36, %v490_v35  ;;  %v498_v39 = vld [vmem:[%s5539_s0 + $0x648] sm:$0xff]  ;;  %v489_v47 = vld [vmem:[%s5539_s0 + $0x600] sm:$0xff] }
  0x5a   :  { %v495_v50 = vld [vmem:[%s5539_s0 + $0x630] sm:$0xff]  ;;  %v502_v55 = vld [vmem:[%s5539_s0 + $0x668] sm:$0xff]  ;;  %v508_v57 = vld [vmem:[%s5539_s0 + $0x698] sm:$0xff] }
  0x5b   :  { %3354 = vmatpush1.bf16.msra.mxu0 %v3353_v28  ;;  %v477_v28 = vld [vmem:[%s5539_s0 + $0x5a0] sm:$0xff]  ;;  %v491_v51 = vld [vmem:[%s5539_s0 + $0x610] sm:$0xff]  ;;  %v510_v59 = vld [vmem:[%s5539_s0 + $0x6a8] sm:$0xff]  ;;  %v3381_v61 = vpack.c.bf16 %v495_v50, %v489_v47 }
  0x5c   :  { %3450 = vmatpush1.bf16.msra.mxu1 %v3449_v29  ;;  %3356 = vmatprep.subr.bf16.mxu0 %v3355_v30  ;;  %v483_v29 = vld [vmem:[%s5539_s0 + $0x5d0] sm:$0xff]  ;;  %v3471_v30 = vpack.c.bf16 %v486_v27, %v480_v25  ;;  %v501_v63 = vld [vmem:[%s5539_s0 + $0x660] sm:$0xff]  ;;  %v514_v4 = vld [vmem:[%s5539_s0 + $0x6c8] sm:$0xff] }
  0x5d   :  { %3452 = vmatprep.subr.bf16.mxu1 %v3451_v34  ;;  %v3377_v31 = vpack.c.bf16 %v483_v29, %v477_v28  ;;  %v3473_v34 = vpack.c.bf16 %v485_v33, %v479_v32  ;;  %v509_v3 = vld [vmem:[%s5539_s0 + $0x6a0] sm:$0xff]  ;;  %v520_v9 = vld [vmem:[%s5539_s0 + $0x6f8] sm:$0xff]  ;;  %v522_v11 = vld [vmem:[%s5539_s0 + $0x708] sm:$0xff] }
  0x5e   :  { %v516_v10 = vld [vmem:[%s5539_s0 + $0x6d8] sm:$0xff]  ;;  %v3387_v17 = vpack.c.bf16 %v520_v9, %v514_v4  ;;  %v515_v19 = vld [vmem:[%s5539_s0 + $0x6d0] sm:$0xff]  ;;  %v526_v21 = vld [vmem:[%s5539_s0 + $0x728] sm:$0xff] }
  0x5f   :  { %3358 = vmatpush1.bf16.msra.mxu0 %v3357_v40  ;;  %v3475_v40 = vpack.c.bf16 %v498_v39, %v492_v37  ;;  %v3483_v18 = vpack.c.bf16 %v522_v11, %v516_v10  ;;  %v528_v23 = vld [vmem:[%s5539_s0 + $0x738] sm:$0xff]  ;;  %v534_v24 = vld [vmem:[%s5539_s0 + $0x768] sm:$0xff]  ;;  %v525_v27 = vld [vmem:[%s5539_s0 + $0x720] sm:$0xff] }
  0x60   :  { %3454 = vmatpush1.bf16.msra.mxu1 %v3453_v41  ;;  %3360 = vmatprep.subr.bf16.mxu0 %v3359_v42  ;;  %v531_v28 = vld [vmem:[%s5539_s0 + $0x750] sm:$0xff]  ;;  %v533_v32 = vld [vmem:[%s5539_s0 + $0x760] sm:$0xff]  ;;  %v538_v33 = vld [vmem:[%s5539_s0 + $0x788] sm:$0xff] }
  0x61   :  { %3456 = vmatprep.subr.bf16.mxu1 %v3455_v46  ;;  %v540_v35 = vld [vmem:[%s5539_s0 + $0x798] sm:$0xff]  ;;  %v546_v36 = vld [vmem:[%s5539_s0 + $0x7c8] sm:$0xff]  ;;  %v3393_v37 = vpack.c.bf16 %v531_v28, %v525_v27  ;;  %v537_v39 = vld [vmem:[%s5539_s0 + $0x780] sm:$0xff] }
  0x62   :  { %v545_v47 = vld [vmem:[%s5539_s0 + $0x7c0] sm:$0xff]  ;;  %v552_v50 = vld [vmem:[%s5539_s0 + $0x7f8] sm:$0xff]  ;;  %v567_v4 = vld [vmem:[%s5539_s0 + $0x870] sm:$0xff] }
  0x63   :  { %3362 = vmatpush1.bf16.msra.mxu0 %v3361_v52  ;;  %v497_v52 = vld [vmem:[%s5539_s0 + $0x640] sm:$0xff]  ;;  %v563_v9 = vld [vmem:[%s5539_s0 + $0x850] sm:$0xff]  ;;  %v574_v11 = vld [vmem:[%s5539_s0 + $0x8a8] sm:$0xff] }
  0x64   :  { %3458 = vmatpush1.bf16.msra.mxu1 %v3457_v53  ;;  %3364 = vmatprep.subr.bf16.mxu0 %v3363_v54  ;;  %v3477_v62 = vpack.c.bf16 %v497_v52, %v491_v51  ;;  %v558_v51 = vld [vmem:[%s5539_s0 + $0x828] sm:$0xff]  ;;  %v569_v10 = vld [vmem:[%s5539_s0 + $0x880] sm:$0xff]  ;;  %v588_v28 = vld [vmem:[%s5539_s0 + $0x918] sm:$0xff] }
  0x65   :  { %3460 = vmatprep.subr.bf16.mxu1 %v3459_v58  ;;  %v504_v58 = vld [vmem:[%s5539_s0 + $0x678] sm:$0xff]  ;;  %v586_v27 = vld [vmem:[%s5539_s0 + $0x908] sm:$0xff] }
  0x66   :  { %v3479_v8 = vpack.c.bf16 %v510_v59, %v504_v58  ;;  %v551_v58 = vld [vmem:[%s5539_s0 + $0x7f0] sm:$0xff]  ;;  %v557_v59 = vld [vmem:[%s5539_s0 + $0x820] sm:$0xff] }
  0x67   :  { %3366 = vmatpush1.bf16.msra.mxu0 %v3365_v0  ;;  %v507_v0 = vld [vmem:[%s5539_s0 + $0x690] sm:$0xff] }
  0x68   :  { %3462 = vmatpush1.bf16.msra.mxu1 %v3461_v1  ;;  %3368 = vmatprep.subr.bf16.mxu0 %v3367_v2  ;;  %v503_v2 = vld [vmem:[%s5539_s0 + $0x670] sm:$0xff] }
  0x69   :  { %3464 = vmatprep.subr.bf16.mxu1 %v3463_v6  ;;  %v3383_v6 = vpack.c.bf16 %v508_v57, %v502_v55  ;;  %v555_v55 = vld [vmem:[%s5539_s0 + $0x810] sm:$0xff]  ;;  %v3495_v57 = vpack.c.bf16 %v558_v51, %v552_v50  ;;  %v338_v50 = vld [vmem:[%s5539_s0 + $0x148] sm:$0xff] }
  0x6b   :  { %3370 = vmatpush1.bf16.msra.mxu0 %v3369_v13  ;;  %v3385_v13 = vpack.c.bf16 %v507_v0, %v501_v63  ;;  %v570_v63 = vld [vmem:[%s5539_s0 + $0x888] sm:$0xff] }
  0x6c   :  { %3466 = vmatpush1.bf16.msra.mxu1 %v3465_v14  ;;  %3372 = vmatprep.subr.bf16.mxu0 %v3371_v15  ;;  %v3481_v14 = vpack.c.bf16 %v509_v3, %v503_v2  ;;  %v513_v15 = vld [vmem:[%s5539_s0 + $0x6c0] sm:$0xff]  ;;  %v3497_v2 = vpack.c.bf16 %v557_v59, %v551_v58 }
  0x6d   :  { %3468 = vmatprep.subr.bf16.mxu1 %v3467_v16  ;;  %v519_v16 = vld [vmem:[%s5539_s0 + $0x6f0] sm:$0xff]  ;;  %v561_v3 = vld [vmem:[%s5539_s0 + $0x840] sm:$0xff] }
  0x6e   :  { %v3389_v25 = vpack.c.bf16 %v519_v16, %v513_v15  ;;  %v582_v15 = vld [vmem:[%s5539_s0 + $0x8e8] sm:$0xff]  ;;  %v3405_v16 = vpack.c.bf16 %v567_v4, %v561_v3  ;;  %v349_v59 = vld [vmem:[%s5539_s0 + $0x1a0] sm:$0xff]  ;;  %v367_v3 = vld [vmem:[%s5539_s0 + $0x230] sm:$0xff] }
  0x6f   :  { %3374 = vmatpush1.bf16.msra.mxu0 %v3373_v20  ;;  %v521_v20 = vld [vmem:[%s5539_s0 + $0x700] sm:$0xff]  ;;  %v374_v4 = vld [vmem:[%s5539_s0 + $0x268] sm:$0xff] }
  0x70   :  { %3470 = vmatpush1.bf16.msra.mxu1 %v3469_v22  ;;  %3376 = vmatprep.subr.bf16.mxu0 %v3375_v26  ;;  %v532_v22 = vld [vmem:[%s5539_s0 + $0x758] sm:$0xff]  ;;  %v3485_v26 = vpack.c.bf16 %v521_v20, %v515_v19 }
  0x71   :  { %3472 = vmatprep.subr.bf16.mxu1 %v3471_v30  ;;  %v3391_v29 = vpack.c.bf16 %v532_v22, %v526_v21  ;;  %v3487_v30 = vpack.c.bf16 %v534_v24, %v528_v23  ;;  %v579_v21 = vld [vmem:[%s5539_s0 + $0x8d0] sm:$0xff]  ;;  %v581_v23 = vld [vmem:[%s5539_s0 + $0x8e0] sm:$0xff] }
  0x72   :  { %v575_v22 = vld [vmem:[%s5539_s0 + $0x8b0] sm:$0xff] }
  0x73   :  { %3378 = vmatpush1.bf16.msra.mxu0 %v3377_v31  ;;  %v527_v31 = vld [vmem:[%s5539_s0 + $0x730] sm:$0xff] }
  0x74   :  { %3474 = vmatpush1.bf16.msra.mxu1 %v3473_v34  ;;  %3380 = vmatprep.subr.bf16.mxu0 %v3379_v38  ;;  %v544_v34 = vld [vmem:[%s5539_s0 + $0x7b8] sm:$0xff]  ;;  %v3489_v38 = vpack.c.bf16 %v533_v32, %v527_v31  ;;  %v301_v31 = vld [vmem:[%s5539_s0 + $0x20] sm:$0xff]  ;;  %v307_v32 = vld [vmem:[%s5539_s0 + $0x50] sm:$0xff] }
  0x75   :  { %3476 = vmatprep.subr.bf16.mxu1 %v3475_v40  ;;  %v543_v40 = vld [vmem:[%s5539_s0 + $0x7b0] sm:$0xff] }
  0x76   :  { %v3397_v52 = vpack.c.bf16 %v543_v40, %v537_v39  ;;  %v313_v39 = vld [vmem:[%s5539_s0 + $0x80] sm:$0xff]  ;;  %v319_v40 = vld [vmem:[%s5539_s0 + $0xb0] sm:$0xff] }
  0xae   :  { %v4466_v41 = vpop.permute.xlu0 %121 }
 0x108   :  { %v207_v42 = vpop.f32.mrb[0].mxu0 }
 0x109   :  { %v208_v44 = vadd.f32 %v207_v42, %v4466_v41  ;;  %v4471_v45 = vpop.f32.mrb[0].mxu1  ;;  %v209_v46 = vpop.f32.mrb[1].mxu0  ;;  %v3395_v42 = vpack.c.bf16 %v544_v34, %v538_v33  ;;  %v314_v33 = vld [vmem:[%s5539_s0 + $0x88] sm:$0xff]  ;;  %v320_v34 = vld [vmem:[%s5539_s0 + $0xb8] sm:$0xff] }
 0x10a   :  { %v210_v48 = vadd.f32 %v209_v46, %v4466_v41  ;;  %v280_v49 = vpop.f32.mrb[1].mxu1  ;;  %v539_v46 = vld [vmem:[%s5539_s0 + $0x790] sm:$0xff]  ;;  %v279_v24 = vadd.f32 %v4471_v45, %v4466_v41 }
 0x10b   :  { %v289_v53 = vmul.f32 %v4468_v43, %v208_v44  ;;  %v281_v54 = vadd.f32 %v280_v49, %v4466_v41  ;;  %vm284_vm2 = vcmp.gt.f32.partialorder %v208_v44, 0.0  ;;  %v556_v49 = vld [vmem:[%s5539_s0 + $0x818] sm:$0xff] }
 0x10c   :  { %v290_v56 = vmul.f32 %v4468_v43, %v210_v48  ;;  %vm285_vm3 = vcmp.gt.f32.partialorder %v210_v48, 0.0  ;;  %v308_v41 = vld [vmem:[%s5539_s0 + $0x58] sm:$0xff]  ;;  %v291_v45 = vmul.f32 %v4468_v43, %v279_v24  ;;  %vm286_vm6 = vcmp.gt.f32.partialorder %v279_v24, 0.0 }
 0x10d   :  { %v292_v60 = vmul.f32 %v4468_v43, %v281_v54  ;;  %vm287_vm4 = vcmp.gt.f32.partialorder %v281_v54, 0.0  ;;  %v4522_v5 = vsel %vm284_vm2, %v208_v44, %v289_v53  ;;  %v3491_v44 = vpack.c.bf16 %v546_v36, %v540_v35  ;;  %v587_v43 = vld [vmem:[%s5539_s0 + $0x910] sm:$0xff] }
 0x10e   :  { %v4508_v1 = vsel %vm285_vm3, %v210_v48, %v290_v56  ;;  %v550_v48 = vld [vmem:[%s5539_s0 + $0x7e8] sm:$0xff]  ;;  %v3493_v53 = vpack.c.bf16 %v545_v47, %v539_v46  ;;  %v3509_v36 = vpack.c.bf16 %v307_v32, %v301_v31  ;;  %v3513_v46 = vpack.c.bf16 %v319_v40, %v313_v39  ;;  %v433_v39 = vld [vmem:[%s5539_s0 + $0x440] sm:$0xff]  ;;  %v439_v40 = vld [vmem:[%s5539_s0 + $0x470] sm:$0xff] }
 0x10f   :  { %659 = vmatprep.mubr.f32.mxu0 %v4508_v1  ;;  %801 = vmatprep.mubr.f32.mxu1 %v4508_v1  ;;  %v4536_v12 = vsel %vm287_vm4, %v281_v54, %v292_v60  ;;  %v549_v54 = vld [vmem:[%s5539_s0 + $0x7e0] sm:$0xff]  ;;  %v3399_v56 = vpack.c.bf16 %v556_v49, %v550_v48  ;;  %v562_v60 = vld [vmem:[%s5539_s0 + $0x848] sm:$0xff]  ;;  %v331_v49 = vld [vmem:[%s5539_s0 + $0x110] sm:$0xff]  ;;  %vm1929_vm2 = vcmask 434536   ;;  %vm1935_vm3 = vcmask 508336  }
 0x110   :  { %660 = vmatmul.mubr.f32.vlgmr.msra.gmra.mrb[2].mxu0 %v4522_v5  ;;  %802 = vmatmul.mubr.f32.vlgmr.msra.gmra.mrb[2].mxu1 %v4522_v5  ;;  %v3401_v0 = vpack.c.bf16 %v555_v55, %v549_v54  ;;  %v325_v48 = vld [vmem:[%s5539_s0 + $0xe0] sm:$0xff]  ;;  %v343_v54 = vld [vmem:[%s5539_s0 + $0x170] sm:$0xff]  ;;  %v350_v55 = vld [vmem:[%s5539_s0 + $0x1a8] sm:$0xff]  ;;  %vm1942_vm4 = vcmask 582136  }
 0x111   :  { %3382 = vmatpush1.bf16.msra.mxu0 %v3381_v61  ;;  %3478 = vmatpush1.bf16.msra.mxu1 %v3477_v62  ;;  %v568_v61 = vld [vmem:[%s5539_s0 + $0x878] sm:$0xff]  ;;  %v3517_v51 = vpack.c.bf16 %v331_v49, %v325_v48  ;;  %v445_v48 = vld [vmem:[%s5539_s0 + $0x4a0] sm:$0xff]  ;;  %v451_v49 = vld [vmem:[%s5539_s0 + $0x4d0] sm:$0xff] }
 0x112   :  { %2939 = vmatprep.mubr.msk.f32.mxu0 %vm591_vm5, %v4536_v12  ;;  %2940 = vmatprep.mubr.msk.f32.mxu1 %vm591_vm5, %v4536_v12  ;;  %v564_v62 = vld [vmem:[%s5539_s0 + $0x858] sm:$0xff] }
 0x113   :  { %3384 = vmatprep.subr.bf16.mxu0 %v3383_v6  ;;  %3480 = vmatprep.subr.bf16.mxu1 %v3479_v8  ;;  %v3403_v6 = vpack.c.bf16 %v568_v61, %v562_v60  ;;  %v3499_v8 = vpack.c.bf16 %v570_v63, %v564_v62  ;;  %v355_v60 = vld [vmem:[%s5539_s0 + $0x1d0] sm:$0xff]  ;;  %v362_v61 = vld [vmem:[%s5539_s0 + $0x208] sm:$0xff]  ;;  %v368_v62 = vld [vmem:[%s5539_s0 + $0x238] sm:$0xff] }
 0x114   :  { %v3525_v63 = vpack.c.bf16 %v355_v60, %v349_v59  ;;  %v469_v59 = vld [vmem:[%s5539_s0 + $0x560] sm:$0xff]  ;;  %v475_v60 = vld [vmem:[%s5539_s0 + $0x590] sm:$0xff] }
 0x115   :  { %3386 = vmatpush1.bf16.msra.mxu0 %v3385_v13  ;;  %3482 = vmatpush1.bf16.msra.mxu1 %v3481_v14  ;;  %v580_v13 = vld [vmem:[%s5539_s0 + $0x8d8] sm:$0xff] }
 0x116   :  { %3388 = vmatprep.subr.bf16.mxu0 %v3387_v17  ;;  %3484 = vmatprep.subr.bf16.mxu1 %v3483_v18  ;;  %v576_v14 = vld [vmem:[%s5539_s0 + $0x8b8] sm:$0xff]  ;;  %v3501_v17 = vpack.c.bf16 %v569_v10, %v563_v9  ;;  %v573_v18 = vld [vmem:[%s5539_s0 + $0x8a0] sm:$0xff]  ;;  %v3407_v19 = vpack.c.bf16 %v580_v13, %v574_v11  ;;  %v379_v11 = vld [vmem:[%s5539_s0 + $0x290] sm:$0xff] }
 0x117   :  { %v3503_v20 = vpack.c.bf16 %v582_v15, %v576_v14  ;;  %v373_v10 = vld [vmem:[%s5539_s0 + $0x260] sm:$0xff]  ;;  %v386_v13 = vld [vmem:[%s5539_s0 + $0x2c8] sm:$0xff]  ;;  %v392_v14 = vld [vmem:[%s5539_s0 + $0x2f8] sm:$0xff] }
 0x118   :  { %v3533_v15 = vpack.c.bf16 %v379_v11, %v373_v10  ;;  %v493_v10 = vld [vmem:[%s5539_s0 + $0x620] sm:$0xff]  ;;  %v499_v11 = vld [vmem:[%s5539_s0 + $0x650] sm:$0xff] }
 0x119   :  { %3390 = vmatpush1.bf16.msra.mxu0 %v3389_v25  ;;  %3486 = vmatpush1.bf16.msra.mxu1 %v3485_v26  ;;  %v3409_v25 = vpack.c.bf16 %v579_v21, %v573_v18  ;;  %v3505_v26 = vpack.c.bf16 %v581_v23, %v575_v22  ;;  %v391_v18 = vld [vmem:[%s5539_s0 + $0x2f0] sm:$0xff]  ;;  %v397_v23 = vld [vmem:[%s5539_s0 + $0x320] sm:$0xff] }
 0x11a   :  { %3392 = vmatprep.subr.bf16.mxu0 %v3391_v29  ;;  %3488 = vmatprep.subr.bf16.mxu1 %v3487_v30  ;;  %v302_v29 = vld [vmem:[%s5539_s0 + $0x28] sm:$0xff]  ;;  %v585_v30 = vld [vmem:[%s5539_s0 + $0x900] sm:$0xff] }
 0x11b   :  { %v3507_v35 = vpack.c.bf16 %v308_v41, %v302_v29  ;;  %v409_v29 = vld [vmem:[%s5539_s0 + $0x380] sm:$0xff]  ;;  %v415_v41 = vld [vmem:[%s5539_s0 + $0x3b0] sm:$0xff] }
 0x11c   :  { %v3545_v31 = vpack.c.bf16 %v415_v41, %v409_v29  ;;  %v542_v29 = vld [vmem:[%s5539_s0 + $0x7a8] sm:$0xff]  ;;  %v548_v41 = vld [vmem:[%s5539_s0 + $0x7d8] sm:$0xff] }
 0x11d   :  { %3394 = vmatpush1.bf16.msra.mxu0 %v3393_v37  ;;  %3490 = vmatpush1.bf16.msra.mxu1 %v3489_v38  ;;  %v4707_v37 = vsel %vm286_vm6, %v279_v24, %v291_v45  ;;  %v3511_v38 = vpack.c.bf16 %v320_v34, %v314_v33  ;;  %v403_v24 = vld [vmem:[%s5539_s0 + $0x350] sm:$0xff]  ;;  %v422_v45 = vld [vmem:[%s5539_s0 + $0x3e8] sm:$0xff]  ;;  %vm1955_vm6 = vcmask 655936  }
 0x11e   :  { %3396 = vmatprep.subr.bf16.mxu0 %v3395_v42  ;;  %3492 = vmatprep.subr.bf16.mxu1 %v3491_v44  ;;  %v326_v42 = vld [vmem:[%s5539_s0 + $0xe8] sm:$0xff]  ;;  %v332_v44 = vld [vmem:[%s5539_s0 + $0x118] sm:$0xff]  ;;  %v427_v33 = vld [vmem:[%s5539_s0 + $0x410] sm:$0xff] }
 0x11f   :  { %v3515_v47 = vpack.c.bf16 %v332_v44, %v326_v42  ;;  %v434_v34 = vld [vmem:[%s5539_s0 + $0x448] sm:$0xff]  ;;  %v452_v44 = vld [vmem:[%s5539_s0 + $0x4d8] sm:$0xff] }
 0x120   :  { %v446_v42 = vld [vmem:[%s5539_s0 + $0x4a8] sm:$0xff] }
 0x121   :  { %3398 = vmatpush1.bf16.msra.mxu0 %v3397_v52  ;;  %3494 = vmatpush1.bf16.msra.mxu1 %v3493_v53  ;;  %v337_v53 = vld [vmem:[%s5539_s0 + $0x140] sm:$0xff] }
 0x122   :  { %3400 = vmatprep.subr.bf16.mxu0 %v3399_v56  ;;  %3496 = vmatprep.subr.bf16.mxu1 %v3495_v57  ;;  %v356_v56 = vld [vmem:[%s5539_s0 + $0x1d8] sm:$0xff]  ;;  %v3521_v57 = vpack.c.bf16 %v343_v54, %v337_v53  ;;  %v457_v53 = vld [vmem:[%s5539_s0 + $0x500] sm:$0xff]  ;;  %v463_v54 = vld [vmem:[%s5539_s0 + $0x530] sm:$0xff] }
 0x123   :  { %v3523_v58 = vpack.c.bf16 %v356_v56, %v350_v55  ;;  %v470_v55 = vld [vmem:[%s5539_s0 + $0x568] sm:$0xff]  ;;  %v476_v56 = vld [vmem:[%s5539_s0 + $0x598] sm:$0xff] }
 0x125   :  { %3402 = vmatpush1.bf16.msra.mxu0 %v3401_v0  ;;  %3498 = vmatpush1.bf16.msra.mxu1 %v3497_v2  ;;  %v3527_v0 = vpack.c.bf16 %v368_v62, %v362_v61  ;;  %v361_v2 = vld [vmem:[%s5539_s0 + $0x200] sm:$0xff]  ;;  %v482_v61 = vld [vmem:[%s5539_s0 + $0x5c8] sm:$0xff]  ;;  %v488_v62 = vld [vmem:[%s5539_s0 + $0x5f8] sm:$0xff] }
 0x126   :  { %3404 = vmatprep.subr.bf16.mxu0 %v3403_v6  ;;  %3500 = vmatprep.subr.bf16.mxu1 %v3499_v8  ;;  %v380_v6 = vld [vmem:[%s5539_s0 + $0x298] sm:$0xff]  ;;  %v3529_v8 = vpack.c.bf16 %v367_v3, %v361_v2  ;;  %v481_v2 = vld [vmem:[%s5539_s0 + $0x5c0] sm:$0xff]  ;;  %v487_v3 = vld [vmem:[%s5539_s0 + $0x5f0] sm:$0xff] }
 0x127   :  { %v3531_v9 = vpack.c.bf16 %v380_v6, %v374_v4  ;;  %v494_v4 = vld [vmem:[%s5539_s0 + $0x628] sm:$0xff]  ;;  %v500_v6 = vld [vmem:[%s5539_s0 + $0x658] sm:$0xff] }
 0x129   :  { %3406 = vmatpush1.bf16.msra.mxu0 %v3405_v16  ;;  %3502 = vmatpush1.bf16.msra.mxu1 %v3501_v17  ;;  %v3535_v16 = vpack.c.bf16 %v392_v14, %v386_v13  ;;  %v385_v17 = vld [vmem:[%s5539_s0 + $0x2c0] sm:$0xff]  ;;  %v506_v13 = vld [vmem:[%s5539_s0 + $0x688] sm:$0xff]  ;;  %v512_v14 = vld [vmem:[%s5539_s0 + $0x6b8] sm:$0xff] }
 0x12a   :  { %3408 = vmatprep.subr.bf16.mxu0 %v3407_v19  ;;  %3504 = vmatprep.subr.bf16.mxu1 %v3503_v20  ;;  %v398_v19 = vld [vmem:[%s5539_s0 + $0x328] sm:$0xff]  ;;  %v404_v20 = vld [vmem:[%s5539_s0 + $0x358] sm:$0xff]  ;;  %v3537_v21 = vpack.c.bf16 %v391_v18, %v385_v17  ;;  %v505_v17 = vld [vmem:[%s5539_s0 + $0x680] sm:$0xff] }
 0x12b   :  { %v3539_v22 = vpack.c.bf16 %v404_v20, %v398_v19  ;;  %v511_v18 = vld [vmem:[%s5539_s0 + $0x6b0] sm:$0xff]  ;;  %v518_v19 = vld [vmem:[%s5539_s0 + $0x6e8] sm:$0xff]  ;;  %v524_v20 = vld [vmem:[%s5539_s0 + $0x718] sm:$0xff] }
 0x12d   :  { %3410 = vmatpush1.bf16.msra.mxu0 %v3409_v25  ;;  %3506 = vmatpush1.bf16.msra.mxu1 %v3505_v26  ;;  %v410_v25 = vld [vmem:[%s5539_s0 + $0x388] sm:$0xff]  ;;  %v416_v26 = vld [vmem:[%s5539_s0 + $0x3b8] sm:$0xff] }
 0x12e   :  { %698 = vmatprep.subr.mxu0 %v586_v27  ;;  %840 = vmatprep.subr.mxu1 %v588_v28  ;;  %v3541_v27 = vpack.c.bf16 %v403_v24, %v397_v23  ;;  %v3543_v28 = vpack.c.bf16 %v416_v26, %v410_v25  ;;  %v517_v23 = vld [vmem:[%s5539_s0 + $0x6e0] sm:$0xff]  ;;  %v523_v24 = vld [vmem:[%s5539_s0 + $0x710] sm:$0xff]  ;;  %v530_v25 = vld [vmem:[%s5539_s0 + $0x748] sm:$0xff] }
 0x131   :  { %699 = vmatpush1.msra.mxu0 %v585_v30  ;;  %841 = vmatpush1.msra.mxu1 %v587_v43  ;;  %v428_v30 = vld [vmem:[%s5539_s0 + $0x418] sm:$0xff]  ;;  %v421_v43 = vld [vmem:[%s5539_s0 + $0x3e0] sm:$0xff] }
 0x132   :  { %731 = vmatmul.mubr.f32.vlgmr.msra.gmra.mrb[2].mxu0 %v4707_v37  ;;  %873 = vmatmul.mubr.f32.vlgmr.msra.gmra.mrb[2].mxu1 %v4707_v37  ;;  %v3547_v32 = vpack.c.bf16 %v428_v30, %v422_v45  ;;  %v3587_v30 = vpack.c.bf16 %v548_v41, %v542_v29 }
 0x133   :  { %3508 = vmatprep.subr.bf16.mxu0 %v3507_v35  ;;  %943 = vmatprep.mubr.f32.mxu0 %v4508_v1  ;;  %v344_v1 = vld [vmem:[%s5539_s0 + $0x178] sm:$0xff] }
 0x134   :  { %3510 = vmatpush1.bf16.msra.mxu0 %v3509_v36  ;;  %v3519_v52 = vpack.c.bf16 %v344_v1, %v338_v50  ;;  %v440_v35 = vld [vmem:[%s5539_s0 + $0x478] sm:$0xff]  ;;  %v3549_v36 = vpack.c.bf16 %v427_v33, %v421_v43  ;;  %v458_v50 = vld [vmem:[%s5539_s0 + $0x508] sm:$0xff] }
 0x135   :  { %3512 = vmatprep.subr.bf16.mxu0 %v3511_v38  ;;  %v3551_v38 = vpack.c.bf16 %v440_v35, %v434_v34  ;;  %v464_v1 = vld [vmem:[%s5539_s0 + $0x538] sm:$0xff]  ;;  %v554_v43 = vld [vmem:[%s5539_s0 + $0x808] sm:$0xff] }
 0x136   :  { %v560_v33 = vld [vmem:[%s5539_s0 + $0x838] sm:$0xff] }
 0x137   :  { %v3591_v35 = vpack.c.bf16 %v560_v33, %v554_v43  ;;  %v2973_v33 = vld [vmem:[%s5541_s27 + $0x88] sm:$0xff] }
 0x138   :  { %3514 = vmatpush1.bf16.msra.mxu0 %v3513_v46  ;;  %v3553_v46 = vpack.c.bf16 %v439_v40, %v433_v39  ;;  %v566_v39 = vld [vmem:[%s5539_s0 + $0x868] sm:$0xff]  ;;  %v572_v40 = vld [vmem:[%s5539_s0 + $0x898] sm:$0xff] }
 0x139   :  { %3516 = vmatprep.subr.bf16.mxu0 %v3515_v47  ;;  %v3555_v47 = vpack.c.bf16 %v452_v44, %v446_v42  ;;  %v3595_v44 = vpack.c.bf16 %v572_v40, %v566_v39 }
 0x13c   :  { %3518 = vmatpush1.bf16.msra.mxu0 %v3517_v51  ;;  %v3557_v51 = vpack.c.bf16 %v451_v49, %v445_v48  ;;  %v578_v48 = vld [vmem:[%s5539_s0 + $0x8c8] sm:$0xff]  ;;  %v584_v49 = vld [vmem:[%s5539_s0 + $0x8f8] sm:$0xff] }
 0x13d   :  { %3520 = vmatprep.subr.bf16.mxu0 %v3519_v52  ;;  %v3559_v52 = vpack.c.bf16 %v464_v1, %v458_v50  ;;  %v3599_v1 = vpack.c.bf16 %v584_v49, %v578_v48 }
 0x140   :  { %3522 = vmatpush1.bf16.msra.mxu0 %v3521_v57  ;;  %v3561_v57 = vpack.c.bf16 %v463_v54, %v457_v53  ;;  %v590_v54 = vld [vmem:[%s5539_s0 + $0x928] sm:$0xff] }
 0x141   :  { %3524 = vmatprep.subr.bf16.mxu0 %v3523_v58  ;;  %v3563_v58 = vpack.c.bf16 %v476_v56, %v470_v55  ;;  %v589_v55 = vld [vmem:[%s5539_s0 + $0x920] sm:$0xff]  ;;  %v2942_v56 = vld [vmem:[%s5541_s27 + $0x10] sm:$0xff] }
 0x142   :  { %3100 = vmatprep.mubr.msk.f32.mxu1 %vm591_vm5, %v2942_v56 }
 0x144   :  { %3526 = vmatpush1.bf16.msra.mxu0 %v3525_v63  ;;  %v3565_v63 = vpack.c.bf16 %v475_v60, %v469_v59 }
 0x145   :  { %3528 = vmatprep.subr.bf16.mxu0 %v3527_v0  ;;  %v3567_v0 = vpack.c.bf16 %v488_v62, %v482_v61  ;;  %v1839_v62 = vld [vmem:[%s5542_s5] sm:$0xff] }
 0x148   :  { %3530 = vmatpush1.bf16.msra.mxu0 %v3529_v8  ;;  %v3569_v8 = vpack.c.bf16 %v487_v3, %v481_v2 }
 0x149   :  { %3532 = vmatprep.subr.bf16.mxu0 %v3531_v9  ;;  %v3571_v9 = vpack.c.bf16 %v500_v6, %v494_v4  ;;  %v2943_v4 = vld [vmem:[%s5541_s27 + $0x18] sm:$0xff]  ;;  %v1021_v6 = vld [vmem:[%s5541_s27] sm:$0xff] }
 0x14c   :  { %3534 = vmatpush1.bf16.msra.mxu0 %v3533_v15  ;;  %v3573_v15 = vpack.c.bf16 %v499_v11, %v493_v10  ;;  %v2948_v11 = vld [vmem:[%s5541_s27 + $0x20] sm:$0xff] }
 0x14d   :  { %3536 = vmatprep.subr.bf16.mxu0 %v3535_v16  ;;  %v3575_v16 = vpack.c.bf16 %v512_v14, %v506_v13 }
 0x150   :  { %3538 = vmatpush1.bf16.msra.mxu0 %v3537_v21  ;;  %v3577_v21 = vpack.c.bf16 %v511_v18, %v505_v17  ;;  %v2953_v18 = vld [vmem:[%s5541_s27 + $0x38] sm:$0xff] }
 0x151   :  { %3540 = vmatprep.subr.bf16.mxu0 %v3539_v22  ;;  %v3579_v22 = vpack.c.bf16 %v524_v20, %v518_v19 }
 0x154   :  { %3542 = vmatpush1.bf16.msra.mxu0 %v3541_v27  ;;  %v529_v27 = vld [vmem:[%s5539_s0 + $0x740] sm:$0xff] }
 0x155   :  { %3544 = vmatprep.subr.bf16.mxu0 %v3543_v28  ;;  %v535_v28 = vld [vmem:[%s5539_s0 + $0x770] sm:$0xff] }
 0x156   :  { %v3585_v45 = vpack.c.bf16 %v535_v28, %v529_v27  ;;  %v2968_v27 = vld [vmem:[%s5541_s27 + $0x70] sm:$0xff] }
 0x158   :  { %3546 = vmatpush1.bf16.msra.mxu0 %v3545_v31  ;;  %v541_v31 = vld [vmem:[%s5539_s0 + $0x7a0] sm:$0xff] }
 0x159   :  { %3548 = vmatprep.subr.bf16.mxu0 %v3547_v32  ;;  %v547_v32 = vld [vmem:[%s5539_s0 + $0x7d0] sm:$0xff] }
 0x15a   :  { %v3589_v34 = vpack.c.bf16 %v547_v32, %v541_v31 }
 0x15c   :  { %3550 = vmatpush1.bf16.msra.mxu0 %v3549_v36  ;;  %v553_v36 = vld [vmem:[%s5539_s0 + $0x800] sm:$0xff] }
 0x15d   :  { %3552 = vmatprep.subr.bf16.mxu0 %v3551_v38  ;;  %v559_v38 = vld [vmem:[%s5539_s0 + $0x830] sm:$0xff] }
 0x15e   :  { %v3593_v42 = vpack.c.bf16 %v559_v38, %v553_v36  ;;  %v1856_v36 = vstv %s2976_s30 }
 0x160   :  { %3554 = vmatpush1.bf16.msra.mxu0 %v3553_v46  ;;  %v565_v46 = vld [vmem:[%s5539_s0 + $0x860] sm:$0xff] }
 0x161   :  { %3556 = vmatprep.subr.bf16.mxu0 %v3555_v47  ;;  %v571_v47 = vld [vmem:[%s5539_s0 + $0x890] sm:$0xff] }
 0x162   :  { %v3597_v50 = vpack.c.bf16 %v571_v47, %v565_v46 }
 0x164   :  { %3558 = vmatpush1.bf16.msra.mxu0 %v3557_v51  ;;  %v577_v51 = vld [vmem:[%s5539_s0 + $0x8c0] sm:$0xff] }
 0x165   :  { %3560 = vmatprep.subr.bf16.mxu0 %v3559_v52  ;;  %v583_v52 = vld [vmem:[%s5539_s0 + $0x8f0] sm:$0xff] }
 0x166   :  { %v3601_v53 = vpack.c.bf16 %v583_v52, %v577_v51  ;;  %v3837_v52 = vmov 1983009808  }
 0x168   :  { %3562 = vmatpush1.bf16.msra.mxu0 %v3561_v57 }
 0x169   :  { %3564 = vmatprep.subr.bf16.mxu0 %v3563_v58 }
 0x16c   :  { %3566 = vmatpush1.bf16.msra.mxu0 %v3565_v63  ;;  %v1840_v63 = vld [vmem:[%s5542_s5 + $0x8] sm:$0xff]  ;;  %s3838_s5 = smov 36  }
 0x16d   :  { %3568 = vmatprep.subr.bf16.mxu0 %v3567_v0 }
 0x170   :  { %3570 = vmatpush1.bf16.msra.mxu0 %v3569_v8 }
 0x171   :  { %3572 = vmatprep.subr.bf16.mxu0 %v3571_v9  ;;  %v1022_v9 = vld [vmem:[%s5541_s27 + $0x8] sm:$0xff] }
 0x173   :  { %944 = vmatmul.mubr.f32.vlgmr.msra.gmra.mrb[4].mxu0 %v4522_v5  ;;  %v536_v5 = vld [vmem:[%s5539_s0 + $0x778] sm:$0xff]  ;;  %s3829_s0 = smov 112  }
 0x174   :  { %3574 = vmatpush1.bf16.msra.mxu0 %v3573_v15  ;;  %2941 = vmatprep.mubr.msk.f32.mxu0 %vm591_vm5, %v4536_v12  ;;  %v3581_v12 = vpack.c.bf16 %v523_v24, %v517_v23  ;;  %v3583_v26 = vpack.c.bf16 %v536_v5, %v530_v25  ;;  %v2949_v15 = vld [vmem:[%s5541_s27 + $0x28] sm:$0xff]  ;;  %v2960_v24 = vld [vmem:[%s5541_s27 + $0x50] sm:$0xff]  ;;  %v2961_v5 = vld [vmem:[%s5541_s27 + $0x58] sm:$0xff] }
 0x175   :  { %3576 = vmatprep.subr.bf16.mxu0 %v3575_v16  ;;  %v2952_v16 = vld [vmem:[%s5541_s27 + $0x30] sm:$0xff]  ;;  %v2957_v23 = vld [vmem:[%s5541_s27 + $0x48] sm:$0xff] }
 0x178   :  { %3578 = vmatpush1.bf16.msra.mxu0 %v3577_v21  ;;  %v2956_v21 = vld [vmem:[%s5541_s27 + $0x40] sm:$0xff] }
 0x179   :  { %3580 = vmatprep.subr.bf16.mxu0 %v3579_v22 }
 0x17c   :  { %3582 = vmatpush1.bf16.msra.mxu0 %v3581_v12  ;;  %v2964_v12 = vld [vmem:[%s5541_s27 + $0x60] sm:$0xff] }
 0x17d   :  { %3584 = vmatprep.subr.bf16.mxu0 %v3583_v26  ;;  %v2965_v26 = vld [vmem:[%s5541_s27 + $0x68] sm:$0xff] }
 0x180   :  { %3586 = vmatpush1.bf16.msra.mxu0 %v3585_v45  ;;  %v2969_v45 = vld [vmem:[%s5541_s27 + $0x78] sm:$0xff] }
 0x181   :  { %3588 = vmatprep.subr.bf16.mxu0 %v3587_v30  ;;  %v2972_v30 = vld [vmem:[%s5541_s27 + $0x80] sm:$0xff]  ;;  %s3836_s27 = smov 110  }
 0x184   :  { %3590 = vmatpush1.bf16.msra.mxu0 %v3589_v34 }
 0x185   :  { %3592 = vmatprep.subr.bf16.mxu0 %v3591_v35 }
 0x188   :  { %3594 = vmatpush1.bf16.msra.mxu0 %v3593_v42 }
 0x189   :  { %3596 = vmatprep.subr.bf16.mxu0 %v3595_v44 }
 0x18c   :  { %3598 = vmatpush1.bf16.msra.mxu0 %v3597_v50 }
 0x18d   :  { %3600 = vmatprep.subr.bf16.mxu0 %v3599_v1 }
 0x190   :  { %3602 = vmatpush1.bf16.msra.mxu0 %v3601_v53  ;;  %v1885_v53 = vunpack.c.l.s4 %v3837_v52 }
 0x191   :  { %982 = vmatprep.subr.mxu0 %v590_v54  ;;  %v1887_v54 = vlaneseq }
 0x193   :  { %v1888_v56 = vshrl.u32 %v1887_v54, 7 }
 0x194   :  { %983 = vmatpush1.msra.mxu0 %v589_v55  ;;  %v1886_v55 = vunpack.c.0.s8 %v1885_v53 }
 0x195   :  { %1015 = vmatmul.mubr.f32.vlgmr.msra.gmra.mrb[4].mxu0 %v4707_v37  ;;  %3178 = vmatprep.subr.mxu0 %v3825_v7 }
 0x205   :  { %v732_v57 = vpop.f32.mrb[2].mxu0  ;;  %v874_v58 = vpop.f32.mrb[2].mxu1 }
 0x206   :  { %v876_v59 = vpop.f32.mrb[3].mxu1  ;;  %1028 = vrot.lane.b32.xlu0 %v732_v57, %s3827_s3  ;;  %v734_v60 = vpop.f32.mrb[3].mxu0 }
 0x207   :  { %1030 = vrot.lane.b32.xlu1 %v734_v60, %s3827_s3  ;;  %s3842_s3 = smov 90  }
 0x20a   :  { %1290 = vrot.lane.b32.xlu0 %v734_v60, %s3828_s7 }
 0x20b   :  { %1200 = vrot.lane.b32.xlu1 %v734_v60, %s3829_s0  ;;  %s3844_s0 = smov 108  }
 0x20e   :  { %1383 = vrot.lane.b32.xlu0 %v874_v58, %s5524_s28  ;;  %s3854_s28 = smov 117  }
 0x20f   :  { %1292 = vrot.lane.b32.xlu1 %v874_v58, %s3828_s7  ;;  %s3843_s7 = smov 18  }
 0x212   :  { %1475 = vrot.lane.b32.xlu0 %v876_v59, %s3831_s8 }
 0x213   :  { %1473 = vrot.lane.b32.xlu1 %v874_v58, %s3831_s8 }
 0x216   :  { %1656 = vrot.lane.b32.xlu0 %v876_v59, %s3832_s4 }
 0x217   :  { %1566 = vrot.lane.b32.xlu1 %v876_v59, %s3833_s29  ;;  %s5543_s29 = sld [smem:[#allocation18_spill]] }
 0x268   :  { %v1016_v37 = vpop.f32.mrb[4].mxu0 }
 0x269   :  { %1749 = vrot.lane.b32.xlu0 %v1016_v37, %s3834_s9  ;;  %1658 = vrot.lane.b32.xlu1 %v1016_v37, %s3832_s4  ;;  %v1018_v61 = vpop.f32.mrb[5].mxu0  ;;  %s3848_s4 = smov 126  }
 0x26d   :  { %1843 = vperm.xlu0 %3782, %v1839_v62   ;;  %1751 = vrot.lane.b32.xlu1 %v1018_v61, %s3834_s9  ;;  %s3849_s9 = smov 101  }
 0x271   :  { %1848 = vperm.xlu1 %3783, %v1840_v63  }
 0x278   :  { %v1029_v0 = vpop.permute.xlu0 %1028 }
 0x279   :  { %v1031_v2 = vpop.permute.xlu1 %1030 }
 0x27a   :  { %v1033_v3 = vsel %vm1032_vm7, %v1029_v0, %v1031_v2  ;;  %vm1962_vm7 = vcmask 729736  }
 0x27b   :  { %3098 = vmatprep.subr.mxu1 %v1033_v3 }
 0x27c   :  { %3099 = vmatpush3.msra.mxu1 %v1033_v3  ;;  %v1291_v13 = vpop.permute.xlu0 %1290 }
 0x27d   :  { %3101 = vmatmul.mubr.msk.f32.vlgmr.msra.gmra.mrb[4].mxu1 %vm591_vm5, %v2943_v4  ;;  %3103 = vmatprep.subr.mxu1 %v732_v57  ;;  %v1201_v8 = vpop.permute.xlu1 %1200 }
 0x27e   :  { %3104 = vmatpush3.msra.mxu1 %v732_v57  ;;  %3105 = vmatprep.mubr.msk.f32.mxu1 %vm591_vm5, %v1021_v6  ;;  %v1889_v57 = vsub.s32 %v1886_v55, %v1888_v56 }
 0x27f   :  { %3108 = vmatprep.subr.mxu1 %v1201_v8 }
 0x280   :  { %v1384_v17 = vpop.permute.xlu0 %1383 }
 0x281   :  { %v1293_v10 = vpop.permute.xlu1 %1292 }
 0x282   :  { %v1295_v14 = vsel %vm1294_vm8, %v1291_v13, %v1293_v10  ;;  %v2082_v10 = vld [vmem:[%s5543_s29 + $0x8] sm:$0xff]  ;;  %vm1968_vm8 = vcmask 803536  }
 0x284   :  { %v1476_v19 = vpop.permute.xlu0 %1475 }
 0x285   :  { %3106 = vmatmul.mubr.msk.f32.vlgmr.msra.gmra.mrb[4].mxu1 %vm591_vm5, %v1022_v9  ;;  %v1474_v20 = vpop.permute.xlu1 %1473  ;;  %v2081_v9 = vld [vmem:[%s5543_s29] sm:$0xff] }
 0x286   :  { %3109 = vmatpush3.msra.mxu1 %v1201_v8  ;;  %3110 = vmatprep.mubr.msk.f32.mxu1 %vm591_vm5, %v2948_v11  ;;  %v1478_v22 = vsel %vm1477_vm9, %v1474_v20, %v1476_v19  ;;  %v3604_v11 = vpack.c.bf16 %v2082_v10, %v2081_v9  ;;  %vm1975_vm9 = vcmask 877336  }
 0x287   :  { %3113 = vmatprep.subr.mxu1 %v1295_v14 }
 0x288   :  { %v1657_v28 = vpop.permute.xlu0 %1656 }
 0x289   :  { %v1567_v25 = vpop.permute.xlu1 %1566 }
 0x28d   :  { %3111 = vmatmul.mubr.msk.f32.vlgmr.msra.gmra.mrb[4].mxu1 %vm591_vm5, %v2949_v15  ;;  %v3845_v15 = vmov 0.0|0.0  }
 0x28e   :  { %3114 = vmatpush3.msra.mxu1 %v1295_v14  ;;  %3115 = vmatprep.mubr.msk.f32.mxu1 %vm591_vm5, %v2952_v16  ;;  %v2083_v16 = vld [vmem:[%s5543_s29 + $0x10] sm:$0xff] }
 0x28f   :  { %3118 = vmatprep.subr.mxu1 %v1384_v17 }
 0x295   :  { %3116 = vmatmul.mubr.msk.f32.vlgmr.msra.gmra.mrb[4].mxu1 %vm591_vm5, %v2953_v18 }
 0x296   :  { %3119 = vmatpush3.msra.mxu1 %v1384_v17  ;;  %3120 = vmatprep.mubr.msk.f32.mxu1 %vm591_vm5, %v2956_v21  ;;  %v2084_v17 = vld [vmem:[%s5543_s29 + $0x18] sm:$0xff]  ;;  %v2085_v21 = vld [vmem:[%s5543_s29 + $0x20] sm:$0xff] }
 0x297   :  { %3123 = vmatprep.subr.mxu1 %v1478_v22  ;;  %v3607_v18 = vpack.c.bf16 %v2084_v17, %v2083_v16 }
 0x29d   :  { %3121 = vmatmul.mubr.msk.f32.vlgmr.msra.gmra.mrb[4].mxu1 %vm591_vm5, %v2957_v23 }
 0x29e   :  { %3124 = vmatpush3.msra.mxu1 %v1478_v22  ;;  %3125 = vmatprep.mubr.msk.f32.mxu1 %vm591_vm5, %v2960_v24  ;;  %v2086_v22 = vld [vmem:[%s5543_s29 + $0x28] sm:$0xff] }
 0x29f   :  { %3128 = vmatprep.subr.mxu1 %v1567_v25  ;;  %v3610_v23 = vpack.c.bf16 %v2086_v22, %v2085_v21 }
 0x2a5   :  { %3126 = vmatmul.mubr.msk.f32.vlgmr.msra.gmra.mrb[4].mxu1 %vm591_vm5, %v2961_v5  ;;  %v2087_v5 = vld [vmem:[%s5543_s29 + $0x30] sm:$0xff] }
 0x2a6   :  { %3129 = vmatpush3.msra.mxu1 %v1567_v25  ;;  %3130 = vmatprep.mubr.msk.f32.mxu1 %vm591_vm5, %v2964_v12  ;;  %v2088_v12 = vld [vmem:[%s5543_s29 + $0x38] sm:$0xff] }
 0x2ad   :  { %3131 = vmatmul.mubr.msk.f32.vlgmr.msra.gmra.mrb[4].mxu1 %vm591_vm5, %v2965_v26  ;;  %v3613_v26 = vpack.c.bf16 %v2088_v12, %v2087_v5  ;;  %v2194_v12 = vld [vmem:[%s5503_s11] sm:$0xff] }
 0x2ae   :  { %3135 = vmatprep.mubr.msk.f32.mxu1 %vm591_vm5, %v2968_v27 }
 0x2db   :  { %v1659_v29 = vpop.permute.xlu1 %1658  ;;  %v1750_v31 = vpop.permute.xlu0 %1749 }
 0x2dc   :  { %v1660_v41 = vsel %vm591_vm5, %v1657_v28, %v1659_v29  ;;  %v2089_v28 = vld [vmem:[%s5543_s29 + $0x40] sm:$0xff]  ;;  %v2090_v29 = vld [vmem:[%s5543_s29 + $0x48] sm:$0xff] }
 0x2dd   :  { %3133 = vmatprep.subr.mxu1 %v1660_v41 }
 0x2de   :  { %3134 = vmatpush3.msra.mxu1 %v1660_v41  ;;  %v3616_v41 = vpack.c.bf16 %v2090_v29, %v2089_v28 }
 0x2df   :  { %3136 = vmatmul.mubr.msk.f32.vlgmr.msra.gmra.mrb[4].mxu1 %vm591_vm5, %v2969_v45  ;;  %v1752_v32 = vpop.permute.xlu1 %1751 }
 0x2e0   :  { %v1754_v43 = vsel %vm1753_vm10, %v1750_v31, %v1752_v32  ;;  %3140 = vmatprep.mubr.msk.f32.mxu1 %vm591_vm5, %v2972_v30  ;;  %v2091_v30 = vld [vmem:[%s5543_s29 + $0x50] sm:$0xff]  ;;  %v2092_v31 = vld [vmem:[%s5543_s29 + $0x58] sm:$0xff] }
 0x2e1   :  { %3138 = vmatprep.subr.mxu1 %v1754_v43 }
 0x2e2   :  { %3139 = vmatpush3.msra.mxu1 %v1754_v43 }
 0x2e3   :  { %3603 = vmatprep.subr.bf16.mxu1 %v3845_v15 }
 0x2e7   :  { %3141 = vmatmul.mubr.msk.f32.vlgmr.msra.gmra.mrb[4].mxu1 %vm591_vm5, %v2973_v33  ;;  %v3619_v33 = vpack.c.bf16 %v2092_v31, %v2091_v30  ;;  %v2198_v31 = vld [vmem:[%s5503_s11 + $0x20] sm:$0xff] }
 0x2e8   :  { %3605 = vmatpush1.bf16.msra.mxu1 %v3604_v11 }
 0x2e9   :  { %3606 = vmatprep.subr.bf16.mxu1 %v3845_v15 }
 0x2ec   :  { %v1844_v38 = vpop.permute.xlu0 %1843  ;;  %3608 = vmatpush1.bf16.msra.mxu1 %v3607_v18 }
 0x2ed   :  { %3609 = vmatprep.subr.bf16.mxu1 %v3845_v15 }
 0x2f0   :  { %v1849_v34 = vpop.permute.xlu1 %1848  ;;  %3611 = vmatpush1.bf16.msra.mxu1 %v3610_v23 }
 0x2f1   :  { %3612 = vmatprep.subr.bf16.mxu1 %v3845_v15 }
 0x2f4   :  { %3614 = vmatpush1.bf16.msra.mxu1 %v3613_v26  ;;  %v2195_v26 = vld [vmem:[%s5503_s11 + $0x8] sm:$0xff] }
 0x2f5   :  { %3615 = vmatprep.subr.bf16.mxu1 %v3845_v15  ;;  %v3631_v29 = vpack.c.bf16 %v2195_v26, %v2194_v12  ;;  %v2463_v12 = vld [vmem:[%s5508_s16 + $0x10] sm:$0xff]  ;;  %v2464_v26 = vld [vmem:[%s5508_s16 + $0x18] sm:$0xff] }
 0x2f8   :  { %3617 = vmatpush1.bf16.msra.mxu1 %v3616_v41  ;;  %v2196_v41 = vld [vmem:[%s5503_s11 + $0x10] sm:$0xff] }
 0x2f9   :  { %3618 = vmatprep.subr.bf16.mxu1 %v3845_v15 }
 0x2fc   :  { %3620 = vmatpush1.bf16.msra.mxu1 %v3619_v33  ;;  %v2200_v33 = vld [vmem:[%s5503_s11 + $0x30] sm:$0xff] }
 0x2fd   :  { %3621 = vmatprep.subr.bf16.mxu1 %v3845_v15 }
 0x3ba   :  { %v3142_v35 = vpop.f32.mrb[4].mxu1 }
 0x3bb   :  { %v1852_v39 = vadd.f32 %v3142_v35, %v1849_v34  ;;  %v1828_v40 = vpop.f32.mrb[5].mxu1  ;;  %v2093_v34 = vld [vmem:[%s5543_s29 + $0x60] sm:$0xff]  ;;  %v2094_v35 = vld [vmem:[%s5543_s29 + $0x68] sm:$0xff] }
 0x3bc   :  { %v1851_v42 = vadd.f32 %v1844_v38, %v1828_v40  ;;  %v2095_v40 = vld [vmem:[%s5543_s29 + $0x70] sm:$0xff] }
 0x3bd   :  { %v1858_v44 = vmul.f32 %v1856_v36, %v1852_v39  ;;  %vm1855_vm11 = vcmp.gt.f32.partialorder %v1852_v39, 0.0 }
 0x3be   :  { %v1857_v46 = vmul.f32 %v1856_v36, %v1851_v42  ;;  %vm1854_vm12 = vcmp.gt.f32.partialorder %v1851_v42, 0.0  ;;  %v3622_v36 = vpack.c.bf16 %v2094_v35, %v2093_v34  ;;  %v2201_v34 = vld [vmem:[%s5503_s11 + $0x38] sm:$0xff] }
 0x3bf   :  { %v1860_v47 = vsel %vm1855_vm11, %v1852_v39, %v1858_v44  ;;  %vm2004_vm11 = vcmask 1041392   ;;  %v3640_v35 = vpack.c.bf16 %v2201_v34, %v2200_v33  ;;  %v2548_v34 = vld [vmem:[%s5510_s18 + $0x10] sm:$0xff] }
 0x3c0   :  { %1865 = vrot.lane.b32.xlu1 %v1860_v47, %s3835_s2  ;;  %v1859_v48 = vsel %vm1854_vm12, %v1851_v42, %v1857_v46  ;;  %v2096_v42 = vld [vmem:[%s5543_s29 + $0x78] sm:$0xff]  ;;  %3623 = vmatpush1.bf16.msra.mxu1 %v3622_v36  ;;  %vm2005_vm12 = vcmask 51202   ;;  %v2202_v36 = vld [vmem:[%s5503_s11 + $0x40] sm:$0xff] }
 0x3c1   :  { %1863 = vrot.lane.b32.xlu0 %v1859_v48, %s3835_s2  ;;  %v3625_v44 = vpack.c.bf16 %v2096_v42, %v2095_v40  ;;  %3624 = vmatprep.subr.bf16.mxu1 %v3845_v15  ;;  %v2204_v40 = vld [vmem:[%s5503_s11 + $0x50] sm:$0xff]  ;;  %v2205_v42 = vld [vmem:[%s5503_s11 + $0x58] sm:$0xff] }
 0x3c4   :  { %3626 = vmatpush1.bf16.msra.mxu1 %v3625_v44  ;;  %v3646_v44 = vpack.c.bf16 %v2205_v42, %v2204_v40  ;;  %v2552_v42 = vld [vmem:[%s5510_s18 + $0x30] sm:$0xff] }
 0x3c5   :  { %3627 = vmatprep.subr.bf16.mxu1 %v3845_v15 }
 0x432   :  { %v1866_v49 = vpop.permute.xlu1 %1865 }
 0x433   :  { %v1870_v50 = vmax.f32 %v1860_v47, %v1866_v49  ;;  %v1864_v1 = vpop.permute.xlu0 %1863  ;;  %v2098_v49 = vld [vmem:[%s5543_s29 + $0x88] sm:$0xff] }
 0x434   :  { %v1869_v51 = vmax.f32 %v1859_v48, %v1864_v1  ;;  %v2097_v48 = vld [vmem:[%s5543_s29 + $0x80] sm:$0xff]  ;;  %s3855_s29 = smov 7  }
 0x435   :  { %1875 = vrot.lane.b32.xlu1 %v1870_v50, %s3836_s27 }
 0x436   :  { %1873 = vrot.lane.b32.xlu0 %v1869_v51, %s3836_s27 }
 0x4a7   :  { %v1876_v58 = vpop.permute.xlu1 %1875 }
 0x4a8   :  { %v1880_v59 = vmax.f32 %v1870_v50, %v1876_v58  ;;  %v1874_v60 = vpop.permute.xlu0 %1873  ;;  %v3628_v50 = vpack.c.bf16 %v2098_v49, %v2097_v48  ;;  %v2208_v49 = vld [vmem:[%s5503_s11 + $0x70] sm:$0xff] }
 0x4a9   :  { %v1879_v37 = vmax.f32 %v1869_v51, %v1874_v60 }
 0x4aa   :  { %v1951_v61 = vrot.slane %v1880_v59, %v1889_v57  ;;  %v1977_v62 = vcombine.high %v1880_v59, %v1880_v59  ;;  %3629 = vmatpush1.bf16.msra.mxu1 %v3628_v50  ;;  %v2209_v50 = vld [vmem:[%s5503_s11 + $0x78] sm:$0xff] }
 0x4ab   :  { %1882 = vst.msk [vmem:[#allocation2] sm:$0x1] %vm1881_vm13, %v1879_v37  ;;  %v1890_v63 = vrot.slane %v1879_v37, %v1889_v57  ;;  %v1911_v3 = vcombine.high %v1879_v37, %v1879_v37  ;;  %3630 = vmatprep.subr.bf16.mxu1 %v3845_v15 }
 0x4ac   :  { %2045 = vrot.lane.b32.xlu1 %v1951_v61, %s3838_s5  ;;  %1952 = vrot.lane.b32.xlu0 %v1951_v61, %s3839_s10  ;;  %v1964_v0 = vcombine.high %v1951_v61, %v1951_v61  ;;  %v5080_v2 = vrot.slane %v1977_v62, %v1889_v57  ;;  %v1957_v8 = vrot.slane %v1951_v61, 7 }
 0x4ad   :  { %v5084_v4 = vcombine.high %v1890_v63, %v1890_v63  ;;  %v5089_v6 = vrot.slane %v1911_v3, %v1889_v57  ;;  %v1891_v14 = vrot.slane %v1890_v63, 7 }
 0x4ae   :  { %v1958_v13 = vrot.slane %v1957_v8, 2  ;;  %v5112_v19 = vcombine.high %v5080_v2, %v5080_v2  ;;  %v1970_v25 = vrot.slane %v1964_v0, 7  ;;  %v1990_v47 = vrot.slane %v5080_v2, 7 }
 0x4af   :  { %v1892_v20 = vrot.slane %v1891_v14, 2  ;;  %v1931_v24 = vcombine.high %v5089_v6, %v5089_v6  ;;  %v1904_v45 = vrot.slane %v5084_v4, 7  ;;  %v1924_v43 = vrot.slane %v5089_v6, 7 }
 0x4b0   :  { %2015 = vrot.lane.b32.xlu0 %v1890_v63, %s3840_s6  ;;  %2053 = vrot.lane.b32.xlu1 %v1964_v0, %s3841_s1  ;;  %v1971_v27 = vrot.slane %v1970_v25, 2  ;;  %s3851_s6 = smov 99   ;;  %v1991_v1 = vrot.slane %v1990_v47, 2  ;;  %v2008_v51 = vrot.slane %v5112_v19, 7  ;;  %v2207_v47 = vld [vmem:[%s5503_s11 + $0x68] sm:$0xff] }
 0x4b1   :  { %v1905_v32 = vrot.slane %v1904_v45, 2  ;;  %v1925_v38 = vrot.slane %v1924_v43, 2  ;;  %v1937_v39 = vrot.slane %v1931_v24, 7  ;;  %v2197_v45 = vld [vmem:[%s5503_s11 + $0x18] sm:$0xff] }
 0x4b2   :  { %v2009_v52 = vrot.slane %v2008_v51, 2  ;;  %v3634_v30 = vpack.c.bf16 %v2197_v45, %v2196_v41  ;;  %v2296_v51 = vld [vmem:[%s5506_s14] sm:$0xff] }
 0x4b3   :  { %v1938_v46 = vrot.slane %v1937_v39, 2  ;;  %3179 = vmatpush3.msra.mxu0 %v2296_v51  ;;  %v2546_v45 = vld [vmem:[%s5510_s18] sm:$0xff]  ;;  %v2644_v51 = vld [vmem:[%s5512_s20 + $0x18] sm:$0xff] }
 0x4b4   :  { %2061 = vrot.lane.b32.xlu1 %v5080_v2, %s3839_s10  ;;  %1965 = vrot.lane.b32.xlu0 %v1964_v0, %s3842_s3  ;;  %s3846_s10 = smov 45  }
 0x4b5   :  { %3654 = vmatprep.subr.bf16.mxu0 %v3845_v15 }
 0x4b8   :  { %1899 = vrot.lane.b32.xlu1 %v5084_v4, %s3843_s7  ;;  %1985 = vrot.lane.b32.xlu0 %v5080_v2, %s3844_s0  ;;  %s3853_s0 = smov 27  }
 0x4bc   :  { %1919 = vrot.lane.b32.xlu1 %v5089_v6, %s3838_s5  ;;  %2023 = vrot.lane.b32.xlu0 %v5084_v4, %s3836_s27  ;;  %s3847_s5 = smov 81   ;;  %s3850_s27 = smov 9  }
 0x4c0   :  { %2049 = vrot.lane.b32.xlu1 %v1958_v13, %s3846_s10  ;;  %1959 = vrot.lane.b32.xlu0 %v1958_v13, %s3847_s5 }
 0x4c4   :  { %1998 = vrot.lane.b32.xlu1 %v5112_v19, %s3848_s4  ;;  %2019 = vrot.lane.b32.xlu0 %v1892_v20, %s3849_s9  ;;  %s3852_s4 = smov 63  }
 0x4c8   :  { %2069 = vrot.lane.b32.xlu1 %v5112_v19, %s3842_s3  ;;  %1932 = vrot.lane.b32.xlu0 %v1931_v24, %s3841_s1  ;;  %s5544_s1 = sld [smem:[#allocation11_spill]] }
 0x4cc   :  { %1893 = vrot.lane.b32.xlu1 %v1892_v20, %s3850_s27  ;;  %1972 = vrot.lane.b32.xlu0 %v1971_v27, %s3851_s6 }
 0x4d0   :  { %2037 = vrot.lane.b32.xlu1 %v1931_v24, %s3843_s7  ;;  %2057 = vrot.lane.b32.xlu0 %v1971_v27, %s3852_s4 }
 0x4d4   :  { %1906 = vrot.lane.b32.xlu1 %v1905_v32, %s3853_s0  ;;  %2027 = vrot.lane.b32.xlu0 %v1905_v32, %s3835_s2  ;;  %v2199_v32 = vld [vmem:[%s5503_s11 + $0x28] sm:$0xff] }
 0x4d5   :  { %v3637_v43 = vpack.c.bf16 %v2199_v32, %v2198_v31 }
 0x4d8   :  { %2033 = vrot.lane.b32.xlu1 %v1925_v38, %s3850_s27  ;;  %1926 = vrot.lane.b32.xlu0 %v1925_v38, %s3846_s10  ;;  %v2203_v38 = vld [vmem:[%s5503_s11 + $0x48] sm:$0xff]  ;;  %s2980_s27 = sld [smem:[#allocation3 + $0x2]] }
 0x4d9   :  { %v3643_v39 = vpack.c.bf16 %v2203_v38, %v2202_v36  ;;  %v2550_v38 = vld [vmem:[%s5510_s18 + $0x20] sm:$0xff] }
 0x4dc   :  { %2041 = vrot.lane.b32.xlu1 %v1938_v46, %s3853_s0  ;;  %1939 = vrot.lane.b32.xlu0 %v1938_v46, %s3852_s4  ;;  %v2206_v46 = vld [vmem:[%s5503_s11 + $0x60] sm:$0xff]  ;;  %s5545_s0 = sld [smem:[#allocation19_spill]] }
 0x4dd   :  { %v3649_v48 = vpack.c.bf16 %v2207_v47, %v2206_v46  ;;  %v2554_v47 = vld [vmem:[%s5510_s18 + $0x40] sm:$0xff] }
 0x4e0   :  { %2065 = vrot.lane.b32.xlu1 %v1991_v1, %s3847_s5  ;;  %1992 = vrot.lane.b32.xlu0 %v1991_v1, %s3854_s28  ;;  %v3652_v1 = vpack.c.bf16 %v2209_v50, %v2208_v49  ;;  %v2642_v49 = vld [vmem:[%s5512_s20 + $0x8] sm:$0xff]  ;;  %v2643_v50 = vld [vmem:[%s5512_s20 + $0x10] sm:$0xff]  ;;  %s2994_s28 = sld [smem:[#allocation3 + $0x5]] }
 0x4e4   :  { %2076 = vrot.lane.b32.xlu1 %v2009_v52, %s3851_s6  ;;  %2010 = vrot.lane.b32.xlu0 %v2009_v52, %s3855_s29  ;;  %v2287_v52 = vld [vmem:[%s5544_s1] sm:$0x3]  ;;  %s2989_s6 = sld [smem:[#allocation3 + $0x3]] }
 0x51e   :  { %v2046_v53 = vpop.permute.xlu1 %2045  ;;  %v1953_v54 = vpop.permute.xlu0 %1952 }
 0x522   :  { %v2016_v55 = vpop.permute.xlu0 %2015  ;;  %v2054_v56 = vpop.permute.xlu1 %2053 }
 0x523   :  { %2018 = vst.msk [vmem:[#allocation2 + $0x1] sm:$0x1] %vm1881_vm13, %v2016_v55  ;;  %vm1988_vm13 = vcmask 951136   ;;  %v2290_v55 = vld [vmem:[%s5505_s13 + $0x10] sm:$0xff] }
 0x526   :  { %v5185_v57 = vpop.permute.xlu1 %2061  ;;  %v1966_v58 = vpop.permute.xlu0 %1965 }
 0x52a   :  { %v1900_v59 = vpop.permute.xlu1 %1899  ;;  %v5187_v60 = vpop.permute.xlu0 %1985 }
 0x52e   :  { %v1920_v37 = vpop.permute.xlu1 %1919  ;;  %v2024_v61 = vpop.permute.xlu0 %2023 }
 0x532   :  { %v2050_v62 = vpop.permute.xlu1 %2049  ;;  %v1960_v63 = vpop.permute.xlu0 %1959 }
 0x536   :  { %v1999_v0 = vpop.permute.xlu1 %1998  ;;  %v2020_v2 = vpop.permute.xlu0 %2019 }
 0x537   :  { %2022 = vst.msk [vmem:[#allocation2 + $0x1] sm:$0x1] %vm1896_vm14, %v2020_v2 }
 0x538   :  { %2026 = vst.msk [vmem:[#allocation2 + $0x1] sm:$0x1] %vm1902_vm15, %v2024_v61  ;;  %v2977_v61 = vld [vmem:[%s5545_s0] ss:$0 sm:$0xff]  ;;  %s5547_s0 = sld [smem:[#allocation12_spill]] }
 0x53a   :  { %v2070_v3 = vpop.permute.xlu1 %2069  ;;  %v1933_v4 = vpop.permute.xlu0 %1932 }
 0x53b   :  { %v2071_v20 = vrot.slane %v2070_v3, 6 }
 0x53e   :  { %v1894_v8 = vpop.permute.xlu1 %1893  ;;  %v1973_v9 = vpop.permute.xlu0 %1972  ;;  %v2454_v41 = vld [vmem:[%s5547_s0] sm:$0x3] }
 0x53f   :  { %1897 = vst.msk [vmem:[#allocation2] sm:$0x1] %vm1896_vm14, %v1894_v8  ;;  %vm2001_vm14 = vcmask 1031168   ;;  %v2294_v8 = vld [vmem:[%s5505_s13 + $0x30] sm:$0xff] }
 0x540   :  { %1903 = vst.msk [vmem:[#allocation2] sm:$0x1] %vm1902_vm15, %v1900_v59  ;;  %vm2072_vm15 = vcmask 736256   ;;  %v2292_v59 = vld [vmem:[%s5505_s13 + $0x20] sm:$0xff] }
 0x541   :  { %v2073_v24 = vsel %vm2072_vm15, %v2071_v20, %v2070_v3 }
 0x542   :  { %v2038_v10 = vpop.permute.xlu1 %2037  ;;  %v2058_v11 = vpop.permute.xlu0 %2057 }
 0x546   :  { %v1907_v13 = vpop.permute.xlu1 %1906  ;;  %v2028_v14 = vpop.permute.xlu0 %2027 }
 0x547   :  { %1910 = vst.msk [vmem:[#allocation2] sm:$0x1] %vm1909_vm0, %v1907_v13  ;;  %2030 = vst.msk [vmem:[#allocation2 + $0x1] sm:$0x1] %vm1909_vm0, %v2028_v14  ;;  %vm1995_vm0 = vcmask 1024936  }
 0x548   :  { %2032 = vst.msk [vmem:[#allocation2 + $0x1] sm:$0x1] %vm1922_vm1, %v5089_v6  ;;  %1923 = vst.msk [vmem:[#allocation2] sm:$0x1] %vm1922_vm1, %v1920_v37  ;;  %v2000_v6 = vrot.slane %v1999_v0, 6 }
 0x549   :  { %vm2006_vm1 = vmor %vm2005_vm12, %vm2004_vm11  ;;  %v2981_v14 = vld [vmem:[%s5504_s12] ss:$0 sm:$0xff]  ;;  %vm2916_vm11 = vcmask 25600  }
 0x54a   :  { %v2034_v16 = vpop.permute.xlu1 %2033  ;;  %v1927_v17 = vpop.permute.xlu0 %1926  ;;  %v2002_v23 = vsel %vm2001_vm14, %v2000_v6, %v1999_v0  ;;  %v2462_v6 = vld [vmem:[%s5508_s16 + $0x8] sm:$0xff] }
 0x54b   :  { %2036 = vst.msk [vmem:[#allocation2 + $0x1] sm:$0x1] %vm1929_vm2, %v2034_v16  ;;  %1930 = vst.msk [vmem:[#allocation2] sm:$0x1] %vm1929_vm2, %v1927_v17  ;;  %vm2013_vm2 = vcmask 122936  }
 0x54c   :  { %2040 = vst.msk [vmem:[#allocation2 + $0x1] sm:$0x1] %vm1935_vm3, %v2038_v10  ;;  %1936 = vst.msk [vmem:[#allocation2] sm:$0x1] %vm1935_vm3, %v1933_v4  ;;  %vm2116_vm3 = vcmask 130048  }
 0x54e   :  { %v2042_v18 = vpop.permute.xlu1 %2041  ;;  %v1940_v19 = vpop.permute.xlu0 %1939 }
 0x54f   :  { %2044 = vst.msk [vmem:[#allocation2 + $0x1] sm:$0x1] %vm1942_vm4, %v2042_v18  ;;  %1943 = vst.msk [vmem:[#allocation2] sm:$0x1] %vm1942_vm4, %v1940_v19  ;;  %vm3856_vm4 = vmmov 0   ;;  %v2461_v19 = vld [vmem:[%s5508_s16] sm:$0xff] }
 0x550   :  { %2048 = vst.msk [vmem:[#allocation2 + $0x1] sm:$0x1] %vm1955_vm6, %v2046_v53  ;;  %1956 = vst.msk [vmem:[#allocation2] sm:$0x1] %vm1955_vm6, %v1953_v54  ;;  %3180 = vmatprep.mubr.msk.f32.mxu0 %vm3856_vm4, %v3825_v7  ;;  %v2288_v53 = vld [vmem:[%s5505_s13] sm:$0xff]  ;;  %v2289_v54 = vld [vmem:[%s5505_s13 + $0x8] sm:$0xff]  ;;  %v3667_v20 = vpack.c.bf16 %v2462_v6, %v2461_v19 }
 0x551   :  { %2052 = vst.msk [vmem:[#allocation2 + $0x1] sm:$0x1] %vm1962_vm7, %v2050_v62  ;;  %1963 = vst.msk [vmem:[#allocation2] sm:$0x1] %vm1962_vm7, %v1960_v63  ;;  %3181 = vmatmul.mubr.msk.f32.vlgmr.msra.gmra.mrb[6].mxu0 %vm591_vm5, %v2287_v52  ;;  %v2191_v63 = vstv %s2980_s27  ;;  %vm2472_vm6 = vcmask 261120   ;;  %v3688_v52 = vpack.c.bf16 %v2644_v51, %v2643_v50  ;;  %vm2562_vm7 = vcmask 588800  }
 0x552   :  { %v2066_v21 = vpop.permute.xlu1 %2065  ;;  %2056 = vst.msk [vmem:[#allocation2 + $0x1] sm:$0x1] %vm1968_vm8, %v2054_v56  ;;  %1969 = vst.msk [vmem:[#allocation2] sm:$0x1] %vm1968_vm8, %v1966_v58  ;;  %v1993_v22 = vpop.permute.xlu0 %1992  ;;  %v2291_v56 = vld [vmem:[%s5505_s13 + $0x18] sm:$0xff]  ;;  %3199 = vmatprep.mubr.msk.f32.mxu0 %vm3856_vm4, %v3825_v7 }
 0x553   :  { %2060 = vst.msk [vmem:[#allocation2 + $0x1] sm:$0x1] %vm1975_vm9, %v2058_v11  ;;  %1976 = vst.msk [vmem:[#allocation2] sm:$0x1] %vm1975_vm9, %v1973_v9  ;;  %v3658_v58 = vpack.c.bf16 %v2291_v56, %v2290_v55  ;;  %v2295_v9 = vld [vmem:[%s5505_s13 + $0x38] sm:$0xff]  ;;  %v2647_v56 = vld [vmem:[%s5512_s20 + $0x30] sm:$0xff] }
 0x554   :  { %2064 = vst.msk [vmem:[#allocation2 + $0x1] sm:$0x1] %vm1988_vm13, %v5185_v57  ;;  %1989 = vst.msk [vmem:[#allocation2] sm:$0x1] %vm1988_vm13, %v5187_v60  ;;  %v3655_v57 = vpack.c.bf16 %v2289_v54, %v2288_v53  ;;  %v2293_v60 = vld [vmem:[%s5505_s13 + $0x28] sm:$0xff]  ;;  %v3664_v10 = vpack.c.bf16 %v2295_v9, %v2294_v8  ;;  %v2645_v53 = vld [vmem:[%s5512_s20 + $0x20] sm:$0xff] }
 0x555   :  { %2068 = vst.msk [vmem:[#allocation2 + $0x1] sm:$0x1] %vm1995_vm0, %v2066_v21  ;;  %1996 = vst.msk [vmem:[#allocation2] sm:$0x1] %vm1995_vm0, %v1993_v22  ;;  %v3661_v37 = vpack.c.bf16 %v2293_v60, %v2292_v59  ;;  %v2984_v22 = vld [vmem:[%s5507_s15] ss:$0 sm:$0xff] }
 0x556   :  { %v2077_v25 = vpop.permute.xlu1 %2076  ;;  %2075 = vst.msk [vmem:[#allocation2 + $0x1] sm:$0x5] %vm2006_vm1, %v2073_v24  ;;  %2007 = vst.msk [vmem:[#allocation2] sm:$0x5] %vm2006_vm1, %v2002_v23  ;;  %v2011_v5 = vpop.permute.xlu0 %2010  ;;  %3656 = vmatpush3.bf16.msra.mxu0 %v3655_v57  ;;  %s5546_s15 = smov 96   ;;  %v2646_v54 = vld [vmem:[%s5512_s20 + $0x28] sm:$0xff] }
 0x557   :  { %2079 = vst.msk [vmem:[#allocation2 + $0x3] sm:$0x1] %vm2013_vm2, %v2077_v25  ;;  %2014 = vst.msk [vmem:[#allocation2 + $0x2] sm:$0x1] %vm2013_vm2, %v2011_v5  ;;  %3657 = vmatprep.subr.bf16.mxu0 %v3845_v15  ;;  %v3691_v55 = vpack.c.bf16 %v2646_v54, %v2645_v53  ;;  %v2648_v57 = vld [vmem:[%s5512_s20 + $0x38] sm:$0xff]  ;;  %v2649_v59 = vld [vmem:[%s5512_s20 + $0x40] sm:$0xff] }
 0x558   :  { %v2650_v60 = vld [vmem:[%s5512_s20 + $0x48] sm:$0xff]  ;;  %v2742_v6 = vld [vmem:[%s5514_s22 + $0x18] sm:$0xff] }
 0x55a   :  { %3659 = vmatpush3.bf16.msra.mxu0 %v3658_v58  ;;  %v3694_v58 = vpack.c.bf16 %v2648_v57, %v2647_v56 }
 0x55b   :  { %3660 = vmatprep.subr.bf16.mxu0 %v3845_v15 }
 0x55e   :  { %v2978_v27 = vld.sshfl [vmem:[#allocation2] sm:$0x33 pattern:$0x76325410]  ;;  %3662 = vmatpush3.bf16.msra.mxu0 %v3661_v37  ;;  %v3697_v37 = vpack.c.bf16 %v2650_v60, %v2649_v59 }
 0x55f   :  { %v2114_v28 = vcombine.high %v2978_v27, %v2978_v27  ;;  %3663 = vmatprep.subr.bf16.mxu0 %v3845_v15 }
 0x561   :  { %2979 = vmatprep.mubr.msk.f32.mxu1 %vm2116_vm3, %v2114_v28 }
 0x562   :  { %2184 = vmatmul.mubr.f32.vlgmr.msra.gmra.mrb[6].mxu1 %v2978_v27  ;;  %3665 = vmatpush3.bf16.msra.mxu0 %v3664_v10  ;;  %v3670_v27 = vpack.c.bf16 %v2464_v26, %v2463_v12 }
 0x563   :  { %3632 = vmatpush3.bf16.msra.mxu1 %v3631_v29  ;;  %3175 = vmatprep.mubr.msk.f32.mxu1 %vm3856_vm4, %v3825_v7 }
 0x564   :  { %3633 = vmatprep.subr.bf16.mxu1 %v3845_v15  ;;  %3684 = vmatprep.subr.bf16.mxu0 %v3845_v15 }
 0x567   :  { %3635 = vmatpush3.bf16.msra.mxu1 %v3634_v30  ;;  %v2547_v30 = vld [vmem:[%s5510_s18 + $0x8] sm:$0xff] }
 0x568   :  { %3636 = vmatprep.subr.bf16.mxu1 %v3845_v15 }
 0x56b   :  { %3638 = vmatpush3.bf16.msra.mxu1 %v3637_v43  ;;  %v3673_v43 = vpack.c.bf16 %v2547_v30, %v2546_v45  ;;  %v2990_v30 = vld [vmem:[%s5513_s21] ss:$0 sm:$0xff] }
 0x56c   :  { %3639 = vmatprep.subr.bf16.mxu1 %v3845_v15 }
 0x56f   :  { %3641 = vmatpush3.bf16.msra.mxu1 %v3640_v35  ;;  %v2549_v35 = vld [vmem:[%s5510_s18 + $0x18] sm:$0xff] }
 0x570   :  { %3642 = vmatprep.subr.bf16.mxu1 %v3845_v15  ;;  %v3676_v36 = vpack.c.bf16 %v2549_v35, %v2548_v34 }
 0x573   :  { %3644 = vmatpush3.bf16.msra.mxu1 %v3643_v39  ;;  %v2551_v39 = vld [vmem:[%s5510_s18 + $0x28] sm:$0xff] }
 0x574   :  { %3645 = vmatprep.subr.bf16.mxu1 %v3845_v15  ;;  %v3679_v40 = vpack.c.bf16 %v2551_v39, %v2550_v38 }
 0x577   :  { %3647 = vmatpush3.bf16.msra.mxu1 %v3646_v44  ;;  %v2553_v44 = vld [vmem:[%s5510_s18 + $0x38] sm:$0xff] }
 0x578   :  { %3648 = vmatprep.subr.bf16.mxu1 %v3845_v15  ;;  %v3682_v46 = vpack.c.bf16 %v2553_v44, %v2552_v42  ;;  %v2835_v42 = vld [vmem:[%s5516_s24 + $0x18] sm:$0xff] }
 0x57b   :  { %3650 = vmatpush3.bf16.msra.mxu1 %v3649_v48  ;;  %v2641_v48 = vld [vmem:[%s5512_s20] sm:$0xff] }
 0x57c   :  { %3651 = vmatprep.subr.bf16.mxu1 %v3845_v15 }
 0x57f   :  { %3653 = vmatpush3.bf16.msra.mxu1 %v3652_v1  ;;  %v3685_v1 = vpack.c.bf16 %v2642_v49, %v2641_v48  ;;  %v2829_v48 = vstv %s2994_s28 }
 0x580   :  { %3666 = vmatprep.subr.bf16.mxu1 %v3845_v15 }
 0x624   :  { %v2366_v11 = vpop.f32.mrb[6].mxu0 }
 0x625   :  { %v3182_v13 = vpop.f32.mrb[7].mxu0 }
 0x626   :  { %v2656_v13 = vld [vmem:[%s5512_s20 + $0x78] sm:$0xff] }
 0x635   :  { %v2185_v62 = vpop.f32.mrb[6].mxu1 }
 0x636   :  { %v2186_v0 = vadd.f32 %v2977_v61, %v2185_v62  ;;  %v2187_v2 = vpop.f32.mrb[7].mxu1  ;;  %v2651_v61 = vld [vmem:[%s5512_s20 + $0x50] sm:$0xff]  ;;  %v2652_v62 = vld [vmem:[%s5512_s20 + $0x58] sm:$0xff] }
 0x637   :  { %v2654_v2 = vld [vmem:[%s5512_s20 + $0x68] sm:$0xff] }
 0x638   :  { %vm2190_vm5 = vcmp.gt.f32.partialorder %v2186_v0, 0.0  ;;  %v2192_v3 = vmul.f32 %v2191_v63, %v2186_v0  ;;  %v3700_v63 = vpack.c.bf16 %v2652_v62, %v2651_v61 }
 0x63a   :  { %v2193_v4 = vsel %vm2190_vm5, %v2186_v0, %v2192_v3  ;;  %v2653_v0 = vld [vmem:[%s5512_s20 + $0x60] sm:$0xff] }
 0x63b   :  { %3176 = vmatmul.mubr.f32.vlgmr.msra.gmra.mrb[8].mxu1 %v2193_v4  ;;  %v3703_v3 = vpack.c.bf16 %v2654_v2, %v2653_v0  ;;  %v2985_v4 = vld [vmem:[%s5509_s17] ss:$0 sm:$0xff] }
 0x63c   :  { %3210 = vmatprep.mubr.msk.f32.mxu1 %vm3856_vm4, %v3825_v7  ;;  %3668 = vmatpush3.bf16.msra.mxu1 %v3667_v20 }
 0x63d   :  { %3669 = vmatprep.subr.bf16.mxu1 %v3845_v15 }
 0x640   :  { %3671 = vmatpush3.bf16.msra.mxu1 %v3670_v27 }
 0x641   :  { %3672 = vmatprep.subr.bf16.mxu1 %v3845_v15 }
 0x70e   :  { %v2283_v16 = vpop.f32.mrb[8].mxu1 }
 0x70f   :  { %v2284_v17 = vadd.f32 %v2981_v14, %v2283_v16  ;;  %v3177_v18 = vpop.f32.mrb[9].mxu1  ;;  %v2739_v16 = vld [vmem:[%s5514_s22] sm:$0xff] }
 0x710   :  { %v2741_v18 = vld [vmem:[%s5514_s22 + $0x10] sm:$0xff] }
 0x711   :  { %3200 = vmatmul.mubr.msk.f32.vlgmr.msra.gmra.mrb[8].mxu0 %vm1753_vm10, %v2284_v17  ;;  %v2740_v17 = vld [vmem:[%s5514_s22 + $0x8] sm:$0xff]  ;;  %v3712_v20 = vpack.c.bf16 %v2742_v6, %v2741_v18 }
 0x712   :  { %3266 = vmatprep.mubr.msk.f32.mxu0 %vm3856_vm4, %v3825_v7  ;;  %3686 = vmatpush3.bf16.msra.mxu0 %v3685_v1  ;;  %v3709_v19 = vpack.c.bf16 %v2740_v17, %v2739_v16  ;;  %v2995_v1 = vld [vmem:[%s5517_s25] ss:$0 sm:$0xff] }
 0x713   :  { %3687 = vmatprep.subr.bf16.mxu0 %v3845_v15 }
 0x716   :  { %3689 = vmatpush3.bf16.msra.mxu0 %v3688_v52 }
 0x717   :  { %3690 = vmatprep.subr.bf16.mxu0 %v3845_v15 }
 0x71a   :  { %3692 = vmatpush3.bf16.msra.mxu0 %v3691_v55 }
 0x71b   :  { %3693 = vmatprep.subr.bf16.mxu0 %v3845_v15 }
 0x71e   :  { %3695 = vmatpush3.bf16.msra.mxu0 %v3694_v58 }
 0x71f   :  { %3696 = vmatprep.subr.bf16.mxu0 %v3845_v15 }
 0x722   :  { %3698 = vmatpush3.bf16.msra.mxu0 %v3697_v37 }
 0x723   :  { %3699 = vmatprep.subr.bf16.mxu0 %v3845_v15 }
 0x726   :  { %3701 = vmatpush3.bf16.msra.mxu0 %v3700_v63 }
 0x727   :  { %3702 = vmatprep.subr.bf16.mxu0 %v3845_v15 }
 0x72a   :  { %3704 = vmatpush3.bf16.msra.mxu0 %v3703_v3 }
 0x72b   :  { %3705 = vmatprep.subr.bf16.mxu0 %v3845_v15 }
 0x7e4   :  { %v2439_v21 = vpop.f32.mrb[8].mxu0 }
 0x7e5   :  { %v2440_v23 = vadd.f32 %v2439_v21, %v2366_v11  ;;  %v3201_v24 = vpop.f32.mrb[9].mxu0  ;;  %v2655_v11 = vld [vmem:[%s5512_s20 + $0x70] sm:$0xff]  ;;  %v2743_v21 = vld [vmem:[%s5514_s22 + $0x20] sm:$0xff] }
 0x7e6   :  { %v3706_v14 = vpack.c.bf16 %v2656_v13, %v2655_v11  ;;  %v2987_v24 = vld [vmem:[%s5511_s19] ss:$0 sm:$0xff]  ;;  %s2991_s19 = sld [smem:[#allocation3 + $0x4]] }
 0x7e7   :  { %v2450_v25 = vadd.f32 %v2984_v22, %v2440_v23  ;;  %v2744_v22 = vld [vmem:[%s5514_s22 + $0x28] sm:$0xff] }
 0x7e8   :  { %3707 = vmatpush3.bf16.msra.mxu0 %v3706_v14  ;;  %v3715_v23 = vpack.c.bf16 %v2744_v22, %v2743_v21 }
 0x7e9   :  { %v2451_v5 = vmul.f32 0.5, %v2450_v25 }
 0x7eb   :  { %v2452_v28 = vmul.f32 1.442695, %v2451_v5  ;;  %v2638_v5 = vstv %s2989_s6 }
 0x7ed   :  { %3784 = vpow2.f32 %v2452_v28 }
 0x7f7   :  { %v3785_v29 = vpop.eup %3784 }
 0x7f8   :  { %2456 = vrot.lane.b32.xlu0 %v3785_v29, %s5546_s15  ;;  %v2745_v29 = vld [vmem:[%s5514_s22 + $0x30] sm:$0xff] }
 0x86a   :  { %v2457_v31 = vpop.permute.xlu0 %2456 }
 0x86b   :  { %v2459_v32 = vmul.f32 %v2457_v31, %v2454_v41  ;;  %v2746_v41 = vld [vmem:[%s5514_s22 + $0x38] sm:$0xff] }
 0x86c   :  { %v3718_v45 = vpack.c.bf16 %v2746_v41, %v2745_v29 }
 0x86d   :  { %v2460_v33 = vadd.f32 %v2459_v32, %v2450_v25  ;;  %v2736_v32 = vstv %s2991_s19 }
 0x86f   :  { %3211 = vmatmul.mubr.msk.f32.vlgmr.msra.gmra.mrb[10].mxu1 %vm2472_vm6, %v2460_v33  ;;  %v2833_v33 = vld [vmem:[%s5516_s24 + $0x8] sm:$0xff] }
 0x870   :  { %3674 = vmatpush3.bf16.msra.mxu1 %v3673_v43  ;;  %3231 = vmatprep.mubr.msk.f32.mxu1 %vm3856_vm4, %v3825_v7  ;;  %v2832_v43 = vld [vmem:[%s5516_s24] sm:$0xff] }
 0x871   :  { %3675 = vmatprep.subr.bf16.mxu1 %v3845_v15  ;;  %v3721_v38 = vpack.c.bf16 %v2833_v33, %v2832_v43 }
 0x874   :  { %3677 = vmatpush3.bf16.msra.mxu1 %v3676_v36 }
 0x875   :  { %3678 = vmatprep.subr.bf16.mxu1 %v3845_v15 }
 0x878   :  { %3680 = vmatpush3.bf16.msra.mxu1 %v3679_v40  ;;  %v2834_v40 = vld [vmem:[%s5516_s24 + $0x10] sm:$0xff]  ;;  %s3857_s24 = smov [#allocation6]  }
 0x879   :  { %3681 = vmatprep.subr.bf16.mxu1 %v3845_v15  ;;  %v3724_v44 = vpack.c.bf16 %v2835_v42, %v2834_v40  ;;  %s2924_s20 = sshll.u32 %s3857_s24, 4  ;;  %s2925_s20 = int_to_ptr.vmem [resolvable:$true] %s2924_s20 }
 0x87a   :  { %p3803_p6 = scmp.lt.s32.totalorder %s2925_s20, %s2925_s20 }
 0x87c   :  { %3683 = vmatpush3.bf16.msra.mxu1 %v3682_v46  ;;  %v2992_v46 = vld [vmem:[%s5515_s23] ss:$0 sm:$0xff]  ;;  %s3798_s23 = scalar_lea.vmem %s2925_s20, 32 }
 0x87d   :  { %3229 = vmatprep.subr.mxu1 %v3825_v7  ;;  %p3799_p5 = scmp.ne.s32.totalorder %s2925_s20, %s3798_s23  ;;  %p3804_p7 = scmp.lt.s32.totalorder %s3798_s23, %s3798_s23 }
 0x87f   :  { %p3805_p8 = por %p3804_p7, %p3803_p6 }
 0x880   :  { %3230 = vmatpush3.msra.mxu1 %v2554_v47 }
 0x881   :  { %3708 = vmatprep.subr.bf16.mxu1 %v3845_v15  ;;  %p3806_p9 = pnand %p3805_p8, %p3799_p5 }
 0x942   :  { %v2542_v8 = vpop.f32.mrb[10].mxu1 }
 0x943   :  { %v2543_v9 = vadd.f32 %v2985_v4, %v2542_v8  ;;  %v3212_v10 = vpop.f32.mrb[11].mxu1 }
 0x945   :  { %3232 = vmatmul.mubr.msk.f32.vlgmr.msra.gmra.mrb[12].mxu1 %vm2562_vm7, %v2543_v9 }
 0x946   :  { %3285 = vmatprep.mubr.msk.f32.mxu1 %vm3856_vm4, %v3825_v7  ;;  %3710 = vmatpush3.bf16.msra.mxu1 %v3709_v19 }
 0x947   :  { %3711 = vmatprep.subr.bf16.mxu1 %v3845_v15 }
 0x94a   :  { %3713 = vmatpush3.bf16.msra.mxu1 %v3712_v20 }
 0x94b   :  { %3714 = vmatprep.subr.bf16.mxu1 %v3845_v15 }
 0x94e   :  { %3716 = vmatpush3.bf16.msra.mxu1 %v3715_v23 }
 0x94f   :  { %3717 = vmatprep.subr.bf16.mxu1 %v3845_v15 }
 0x952   :  { %3719 = vmatpush3.bf16.msra.mxu1 %v3718_v45 }
 0x953   :  { %3720 = vmatprep.subr.bf16.mxu1 %v3845_v15 }
 0xa18   :  { %v2632_v25 = vpop.f32.mrb[12].mxu1 }
 0xa19   :  { %v2633_v12 = vadd.f32 %v2987_v24, %v2632_v25  ;;  %v3233_v26 = vpop.f32.mrb[13].mxu1 }
 0xa1b   :  { %vm2637_vm8 = vcmp.gt.f32.partialorder %v2633_v12, 0.0  ;;  %v2639_v27 = vmul.f32 %v2638_v5, %v2633_v12 }
 0xa1d   :  { %v2640_v28 = vsel %vm2637_vm8, %v2633_v12, %v2639_v27 }
 0xa1e   :  { %3267 = vmatmul.mubr.f32.vlgmr.msra.gmra.mrb[10].mxu0 %v2640_v28 }
 0xaf1   :  { %v2730_v31 = vpop.f32.mrb[10].mxu0 }
 0xaf2   :  { %v2731_v34 = vadd.f32 %v2990_v30, %v2730_v31  ;;  %v3268_v35 = vpop.f32.mrb[11].mxu0 }
 0xaf4   :  { %vm2735_vm9 = vcmp.gt.f32.partialorder %v2731_v34, 0.0  ;;  %v2737_v36 = vmul.f32 %v2736_v32, %v2731_v34 }
 0xaf6   :  { %v2738_v39 = vsel %vm2735_vm9, %v2731_v34, %v2737_v36 }
 0xaf7   :  { %3286 = vmatmul.mubr.msk.f32.vlgmr.msra.gmra.mrb[14].mxu1 %vm1753_vm10, %v2738_v39 }
 0xaf8   :  { %3722 = vmatpush3.bf16.msra.mxu1 %v3721_v38  ;;  %3296 = vmatprep.mubr.msk.f32.mxu1 %vm3856_vm4, %v3825_v7 }
 0xaf9   :  { %3723 = vmatprep.subr.bf16.mxu1 %v3845_v15 }
 0xafc   :  { %3725 = vmatpush3.bf16.msra.mxu1 %v3724_v44 }
 0xbca   :  { %v2823_v47 = vpop.f32.mrb[14].mxu1 }
 0xbcb   :  { %v2824_v7 = vadd.f32 %v2992_v46, %v2823_v47  ;;  %v3287_v49 = vpop.f32.mrb[15].mxu1 }
 0xbcd   :  { %vm2828_vm10 = vcmp.gt.f32.partialorder %v2824_v7, 0.0  ;;  %v2830_v15 = vmul.f32 %v2829_v48, %v2824_v7 }
 0xbcf   :  { %v2831_v50 = vsel %vm2828_vm10, %v2824_v7, %v2830_v15 }
 0xbd0   :  { %3297 = vmatmul.mubr.msk.f32.vlgmr.msra.gmra.mrb[16].mxu1 %vm2472_vm6, %v2831_v50 }
 0xca3   :  { %v2912_v51 = vpop.f32.mrb[16].mxu1 }
 0xca4   :  { %v2913_v52 = vadd.f32 %v2995_v1, %v2912_v51  ;;  %v3298_v53 = vpop.f32.mrb[17].mxu1 }
 0xca6   :  { %2917 = vst.msk [vmem:[#allocation6] sm:$0x3] %vm2916_vm11, %v2913_v52 }
 0xca7   :  { %3809 = shalt.err (!%p3806_p9)
}
 0xca8   :  { %s3810_s15 = scalar_lea.hbm %s5518_s26, 32 }
 0xca9   :  { %p3811_p10 = scmp.ne.s32.totalorder %s5518_s26, %s3810_s15  ;;  %p3814_p11 = scmp.lt.u32.totalorder %s3810_s15, %s5518_s26 }
 0xcab   :  { %p3816_p12 = pnand %p3814_p11, %p3811_p10 }
 0xcad   :  { %3819 = shalt.err (!%p3816_p12)
}
 0xcae   :  { %2927 = dma.vmem_to_hbm [thread:$0]  %s2925_s20, 32, %s5518_s26, [#allocation4]  }
 0xcaf   :  { %3822 = dma.done.wait [#allocation4], 32  }
 0xcb0   :  { %3823 = vsyncadd [#allocation4], 4294967264 }
 0xcb1   :  { %2931 = vsyncpa [#allocation4], 1 }
 0xcb2   :  { %2932 = vsyncpa [#allocation5], 1 }

</bundles_post_ra>
